<compile_context>
chip_gen: v5e
topology: v5e:2x2
jax: 0.10.0
libtpu: 0.0.40
codegen_flags: <defaults>
</compile_context>

<pallas_src>
import jax
import jax.numpy as jnp
import numpy as np
from jax.experimental import pallas as pl
from jax.experimental.pallas import tpu as pltpu

EPS = 1e-5  # nn.InstanceNorm2d default eps

# conv geometry of RefConv(64, 64, 3, (1, 2), padding=(0, 1))
_KH, _KW = 3, 3
_SH, _SW = 1, 2
_PH, _PW = 0, 1


def _conv_out_hw(hc, wc):
    ho = (hc + 2 * _PH - _KH) // _SH + 1
    wo = (wc + 2 * _PW - _KW) // _SW + 1
    return ho, wo


# --------------------------------------------------------------------------
# Fused kernel: conv (one matmul) + InstanceNorm + PReLU
#               + (flat-chop ∘ gamma/beta Linears) (one matmul) + FiLM
# --------------------------------------------------------------------------
def _make_kernel(hw, cout, f):
    hwf = hw * f
    inv_hw = 1.0 / hw

    def kernel(ctx_ref, wfull_ref, aff_ref, wp_ref, gbb_ref, xin_ref, o_ref):
        # 1) Whole Conv2d (pad/stride/patch-extract folded into wfull) as ONE
        #    MXU matmul on the raw NCHW-flat context:
        #    [B, Cin*Hc*Wc] @ [Cin*Hc*Wc, HW*Cout]  (bf16 operands, f32 acc).
        conv = jnp.dot(ctx_ref[...].astype(jnp.bfloat16), wfull_ref[...],
                       preferred_element_type=jnp.float32)        # [B, HW*Cout]
        # conv bias omitted on purpose: it is constant per (b, c) over the
        # spatial axis, so InstanceNorm centering cancels it exactly.

        # 2) InstanceNorm2d stats per (b, c): reduce over the HW s-major
        #    64-lane slabs of the in-register conv value (no VMEM round trip).
        mean = sum([conv[:, s * cout:(s + 1) * cout] for s in range(hw)]) * inv_hw
        cen = conv - jnp.concatenate([mean] * hw, axis=-1)
        sq = cen * cen
        var = sum([sq[:, s * cout:(s + 1) * cout] for s in range(hw)]) * inv_hw
        inv_t = jnp.concatenate([jax.lax.rsqrt(var + EPS)] * hw, axis=-1)

        # 3) InstanceNorm affine + PReLU (per-channel params pre-tiled to the
        #    s-major lane layout in prepare_params); f32 VPU math throughout.
        y = cen * inv_t * aff_ref[0:1, :] + aff_ref[1:2, :]
        y = jnp.where(y >= 0.0, y, aff_ref[2:3, :] * y)

        # 4) (NCHW flat-chop ∘ gamma/beta Linears) folded into ONE matmul:
        #    [B, HW*Cout] @ [HW*Cout, 2*HW*F]  (gamma | beta on the lane axis).
        gb = jnp.dot(y.astype(jnp.bfloat16), wp_ref[...],
                     preferred_element_type=jnp.float32) + gbb_ref[...]

        # 5) FiLM modulation on the lane-dense flat view of x.
        o_ref[...] = xin_ref[...] * gb[:, :hwf] + gb[:, hwf:]

    return kernel


# --------------------------------------------------------------------------
# One-time (hoisted) parameter packing
# --------------------------------------------------------------------------
def prepare_params(params, context_shape):
    _, cin, hc, wc = context_shape
    cout = params["conv_w"].shape[0]
    ho, wo = _conv_out_hw(hc, wc)
    hw = ho * wo
    f = params["g_w"].shape[0]

    # --- whole conv folded into [Cin*Hc*Wc, HW*Cout] (identity-basis conv) ---
    kdim = cin * hc * wc
    eye = jnp.eye(kdim, dtype=jnp.float32).reshape(kdim, cin, hc, wc)
    basis = jax.lax.conv_general_dilated(
        eye, params["conv_w"].astype(jnp.float32),
        window_strides=(_SH, _SW), padding=((_PH, _PH), (_PW, _PW)),
        dimension_numbers=("NCHW", "OIHW", "NCHW"),
        precision=jax.lax.Precision.HIGHEST)               # [Kdim, Cout, Ho, Wo]
    wfull = jnp.transpose(basis, (0, 2, 3, 1)).reshape(kdim, hw * cout)
    wfull = wfull.astype(jnp.bfloat16)                      # lane = s*Cout + c

    # --- per-channel IN/PReLU params pre-tiled to the s-major lane layout ---
    aff = jnp.stack([jnp.tile(params["in_w"], hw),
                     jnp.tile(params["in_b"], hw),
                     jnp.tile(params["prelu_a"], hw)], axis=0).astype(jnp.float32)

    # --- (flat-chop ∘ gamma/beta Linears) folded into ONE [HW*Cout, 2*HW*F] ---
    #   per-batch NCHW flat index of y[b, c, s]:  k = c*HW + s
    #   flat-chop row within batch: i = k // Cout, column in that row: j = k % Cout
    #   wp2d[s*Cout + c, i*F + f]        = g_w[f, j]
    #   wp2d[s*Cout + c, HW*F + i*F + f] = b_w[f, j]
    s_idx = jnp.arange(hw)[:, None]
    c_idx = jnp.arange(cout)[None, :]
    k = c_idx * hw + s_idx                                  # [HW, Cout]
    i = k // cout
    j = k % cout
    g_gather = jnp.transpose(params["g_w"][:, j], (1, 2, 0))   # [HW, Cout, F]
    b_gather = jnp.transpose(params["b_w"][:, j], (1, 2, 0))
    onehot = (jnp.arange(hw)[None, None, :] == i[:, :, None]).astype(jnp.float32)
    g_full = onehot[..., None] * g_gather[:, :, None, :]       # [HW, Cout, HW, F]
    b_full = onehot[..., None] * b_gather[:, :, None, :]
    wp2d = jnp.concatenate([g_full.reshape(hw * cout, hw * f),
                            b_full.reshape(hw * cout, hw * f)],
                           axis=-1).astype(jnp.bfloat16)       # row = s*Cout + c

    gbbias = jnp.concatenate([jnp.tile(params["g_b"], hw),
                              jnp.tile(params["b_b"], hw)]
                             ).reshape(1, 2 * hw * f).astype(jnp.float32)

    return {"wfull": wfull, "aff": aff, "wp2d": wp2d, "gbbias": gbbias,
            "hw": hw, "cout": cout, "f": f}


# --------------------------------------------------------------------------
# Wrapper
# --------------------------------------------------------------------------
def build_film2c(prep):
    hw, cout, f = prep["hw"], prep["cout"], prep["f"]
    hwf = hw * f
    kernel = _make_kernel(hw, cout, f)
    wfull, aff, wp2d, gbbias = prep["wfull"], prep["aff"], prep["wp2d"], prep["gbbias"]

    @jax.jit
    def _run(x, context, wfull, aff, wp2d, gbbias):
        bsz = context.shape[0]
        ctx_flat = context.reshape(bsz, -1).astype(jnp.float32)  # NCHW flatten (no copy)
        x2 = x.reshape(bsz, hwf).astype(jnp.float32)             # lane-dense flat view
        out2 = pl.pallas_call(
            kernel,
            out_shape=jax.ShapeDtypeStruct((bsz, hwf), jnp.float32),
        )(ctx_flat, wfull, aff, wp2d, gbbias, x2)
        return out2.reshape(x.shape).astype(x.dtype)

    def film2c(x, context):
        bsz = context.shape[0]
        assert x.size == bsz * hwf, \
            "input.numel() must equal (B*Ho*Wo)*feature_size"
        return _run(x, context, wfull, aff, wp2d, gbbias)

    return film2c


# --------------------------------------------------------------------------
# Pure-JAX references for validation
# --------------------------------------------------------------------------
def _ref_film2c(x, context, p, *, bf16_operands):
    """bf16_operands=True mirrors the kernel's deliberate bf16 MXU-operand
    precision (f32 accumulation); False is the pure-f32 PyTorch reference."""
    q = ((lambda a: a.astype(jnp.bfloat16).astype(jnp.float32))
         if bf16_operands else (lambda a: a))
    conv = jax.lax.conv_general_dilated(
        q(context), q(p["conv_w"]), window_strides=(_SH, _SW),
        padding=((_PH, _PH), (_PW, _PW)),
        dimension_numbers=("NCHW", "OIHW", "NCHW"),
        precision=jax.lax.Precision.HIGHEST)
    conv = conv + p["conv_b"][None, :, None, None]
    mean = conv.mean(axis=(2, 3), keepdims=True)
    var = ((conv - mean) ** 2).mean(axis=(2, 3), keepdims=True)
    y = (conv - mean) * jax.lax.rsqrt(var + EPS)
    y = y * p["in_w"][None, :, None, None] + p["in_b"][None, :, None, None]
    y = jnp.where(y >= 0.0, y, p["prelu_a"][None, :, None, None] * y)
    ctx_rows = y.reshape(-1, y.shape[1])
    gamma = jnp.dot(q(ctx_rows), q(p["g_w"]).T,
                    precision=jax.lax.Precision.HIGHEST) + p["g_b"]
    beta = jnp.dot(q(ctx_rows), q(p["b_w"]).T,
                   precision=jax.lax.Precision.HIGHEST) + p["b_b"]
    return x * gamma.reshape(x.shape) + beta.reshape(x.shape)


# --------------------------------------------------------------------------
if __name__ == "__main__":
    key = jax.random.PRNGKey(0)
    ks = jax.random.split(key, 12)

    C_CTX = 64          # conv_2 channels == FiLM2C input_size
    FEATURE_SIZE = 32   # FiLM2C feature_size

    # x: [2, 4, 4, 8]; context: [2, 64, 3, 8] -> conv_2 out [2, 64, 1, 4]
    # -> view(-1, 64) = 8 rows -> Linear(64, 32) -> 8*32 = 256 = x.numel().
    x = jax.random.normal(ks[0], (2, 4, 4, 8), jnp.float32)
    context = jax.random.normal(ks[1], (2, C_CTX, 3, 8), jnp.float32)

    params = {
        "conv_w": 0.05 * jax.random.normal(ks[2], (C_CTX, C_CTX, 3, 3), jnp.float32),
        "conv_b": 0.05 * jax.random.normal(ks[3], (C_CTX,), jnp.float32),
        "in_w": 1.0 + 0.1 * jax.random.normal(ks[4], (C_CTX,), jnp.float32),
        "in_b": 0.1 * jax.random.normal(ks[5], (C_CTX,), jnp.float32),
        "prelu_a": jnp.full((C_CTX,), 0.25, jnp.float32),
        "g_w": 0.1 * jax.random.normal(ks[6], (FEATURE_SIZE, C_CTX), jnp.float32),
        "g_b": 0.1 * jax.random.normal(ks[7], (FEATURE_SIZE,), jnp.float32),
        "b_w": 0.1 * jax.random.normal(ks[8], (FEATURE_SIZE, C_CTX), jnp.float32),
        "b_b": 0.1 * jax.random.normal(ks[9], (FEATURE_SIZE,), jnp.float32),
    }

    prep = prepare_params(params, context.shape)   # hoisted one-time weight packing
    film2c = build_film2c(prep)
    out = jax.block_until_ready(film2c(x, context))

    # Strict check vs a reference with matching bf16 MXU-operand precision.
    ref_bf16 = jax.block_until_ready(_ref_film2c(x, context, params, bf16_operands=True))
    np.testing.assert_allclose(np.asarray(out), np.asarray(ref_bf16),
                               rtol=2e-2, atol=2e-2)

    # Loose sanity check vs the pure-f32 PyTorch-equivalent reference
    # (bf16 MXU operands per the perf review -> slightly larger tolerance).
    ref_f32 = jax.block_until_ready(_ref_film2c(x, context, params, bf16_operands=False))
    np.testing.assert_allclose(np.asarray(out), np.asarray(ref_f32),
                               rtol=1e-1, atol=1e-1)

    print("KERNEL_OK")
</pallas_src>

<mosaic_0001>
module attributes {stable_mosaic.version = 11 : i64} {
  func.func @kernel(%arg0: memref<2x1536xf32, #tpu.memory_space<vmem>>, %arg1: memref<1536x256xbf16, #tpu.memory_space<vmem>>, %arg2: memref<3x256xf32, #tpu.memory_space<vmem>>, %arg3: memref<256x256xbf16, #tpu.memory_space<vmem>>, %arg4: memref<1x256xf32, #tpu.memory_space<vmem>>, %arg5: memref<2x128xf32, #tpu.memory_space<vmem>>, %arg6: memref<2x128xf32, #tpu.memory_space<vmem>>) attributes {dimension_semantics = [], scalar_prefetch = 0 : i64, scratch_operands = 0 : i64, tpu.core_type = #tpu.core_type<tc>} {
    %c0 = arith.constant 0 : index
    %c0_0 = arith.constant 0 : index
    %0 = vector.load %arg0[%c0, %c0_0] : memref<2x1536xf32, #tpu.memory_space<vmem>>, vector<2x1536xf32>
    %1 = arith.truncf %0 : vector<2x1536xf32> to vector<2x1536xbf16>
    %c0_1 = arith.constant 0 : index
    %c0_2 = arith.constant 0 : index
    %2 = vector.load %arg1[%c0_1, %c0_2] : memref<1536x256xbf16, #tpu.memory_space<vmem>>, vector<1536x256xbf16>
    %cst = arith.constant dense<0.000000e+00> : vector<2x256xf32>
    %3 = tpu.matmul %1, %2, %cst {dimension_numbers = #tpu.dot_dimension_numbers<[1], [0], [0], [1], [0, 0, 1, 1], [], []>} : vector<2x1536xbf16>, vector<1536x256xbf16>, vector<2x256xf32> -> vector<2x256xf32>
    %4 = vector.extract_strided_slice %3 {offsets = [0, 0], sizes = [2, 64], strides = [1, 1]} : vector<2x256xf32> to vector<2x64xf32>
    %5 = vector.extract_strided_slice %3 {offsets = [0, 64], sizes = [2, 64], strides = [1, 1]} : vector<2x256xf32> to vector<2x64xf32>
    %6 = vector.extract_strided_slice %3 {offsets = [0, 128], sizes = [2, 64], strides = [1, 1]} : vector<2x256xf32> to vector<2x64xf32>
    %7 = vector.extract_strided_slice %3 {offsets = [0, 192], sizes = [2, 64], strides = [1, 1]} : vector<2x256xf32> to vector<2x64xf32>
    %cst_3 = arith.constant 0.000000e+00 : f32
    %8 = vector.broadcast %cst_3 : f32 to vector<2x64xf32>
    %9 = arith.addf %8, %4 : vector<2x64xf32>
    %10 = arith.addf %9, %5 : vector<2x64xf32>
    %11 = arith.addf %10, %6 : vector<2x64xf32>
    %12 = arith.addf %11, %7 : vector<2x64xf32>
    %cst_4 = arith.constant 2.500000e-01 : f32
    %13 = vector.broadcast %cst_4 : f32 to vector<2x64xf32>
    %14 = arith.mulf %12, %13 : vector<2x64xf32>
    %15 = tpu.concatenate %14, %14, %14, %14 in 1 : vector<2x64xf32>, vector<2x64xf32>, vector<2x64xf32>, vector<2x64xf32> -> vector<2x256xf32>
    %16 = arith.subf %3, %15 : vector<2x256xf32>
    %17 = arith.mulf %16, %16 : vector<2x256xf32>
    %18 = vector.extract_strided_slice %17 {offsets = [0, 0], sizes = [2, 64], strides = [1, 1]} : vector<2x256xf32> to vector<2x64xf32>
    %19 = vector.extract_strided_slice %17 {offsets = [0, 64], sizes = [2, 64], strides = [1, 1]} : vector<2x256xf32> to vector<2x64xf32>
    %20 = vector.extract_strided_slice %17 {offsets = [0, 128], sizes = [2, 64], strides = [1, 1]} : vector<2x256xf32> to vector<2x64xf32>
    %21 = vector.extract_strided_slice %17 {offsets = [0, 192], sizes = [2, 64], strides = [1, 1]} : vector<2x256xf32> to vector<2x64xf32>
    %cst_5 = arith.constant 0.000000e+00 : f32
    %22 = vector.broadcast %cst_5 : f32 to vector<2x64xf32>
    %23 = arith.addf %22, %18 : vector<2x64xf32>
    %24 = arith.addf %23, %19 : vector<2x64xf32>
    %25 = arith.addf %24, %20 : vector<2x64xf32>
    %26 = arith.addf %25, %21 : vector<2x64xf32>
    %cst_6 = arith.constant 2.500000e-01 : f32
    %27 = vector.broadcast %cst_6 : f32 to vector<2x64xf32>
    %28 = arith.mulf %26, %27 : vector<2x64xf32>
    %cst_7 = arith.constant 9.99999974E-6 : f32
    %29 = vector.broadcast %cst_7 : f32 to vector<2x64xf32>
    %30 = arith.addf %28, %29 : vector<2x64xf32>
    %31 = math.rsqrt %30 : vector<2x64xf32>
    %32 = tpu.concatenate %31, %31, %31, %31 in 1 : vector<2x64xf32>, vector<2x64xf32>, vector<2x64xf32>, vector<2x64xf32> -> vector<2x256xf32>
    %33 = arith.mulf %16, %32 : vector<2x256xf32>
    %c0_8 = arith.constant 0 : index
    %c0_9 = arith.constant 0 : index
    %34 = vector.load %arg2[%c0_8, %c0_9] : memref<3x256xf32, #tpu.memory_space<vmem>>, vector<1x256xf32>
    %35 = vector.broadcast %34 : vector<1x256xf32> to vector<2x256xf32>
    %36 = arith.mulf %33, %35 : vector<2x256xf32>
    %c1 = arith.constant 1 : index
    %c0_10 = arith.constant 0 : index
    %37 = vector.load %arg2[%c1, %c0_10] : memref<3x256xf32, #tpu.memory_space<vmem>>, vector<1x256xf32>
    %38 = vector.broadcast %37 : vector<1x256xf32> to vector<2x256xf32>
    %39 = arith.addf %36, %38 : vector<2x256xf32>
    %cst_11 = arith.constant 0.000000e+00 : f32
    %40 = vector.broadcast %cst_11 : f32 to vector<2x256xf32>
    %41 = arith.cmpf oge, %39, %40 : vector<2x256xf32>
    %c2 = arith.constant 2 : index
    %c0_12 = arith.constant 0 : index
    %42 = vector.load %arg2[%c2, %c0_12] : memref<3x256xf32, #tpu.memory_space<vmem>>, vector<1x256xf32>
    %43 = vector.broadcast %42 : vector<1x256xf32> to vector<2x256xf32>
    %44 = arith.mulf %43, %39 : vector<2x256xf32>
    %45 = arith.select %41, %39, %44 : vector<2x256xi1>, vector<2x256xf32>
    %46 = arith.truncf %45 : vector<2x256xf32> to vector<2x256xbf16>
    %c0_13 = arith.constant 0 : index
    %c0_14 = arith.constant 0 : index
    %47 = vector.load %arg3[%c0_13, %c0_14] : memref<256x256xbf16, #tpu.memory_space<vmem>>, vector<256x256xbf16>
    %cst_15 = arith.constant dense<0.000000e+00> : vector<2x256xf32>
    %48 = tpu.matmul %46, %47, %cst_15 {dimension_numbers = #tpu.dot_dimension_numbers<[1], [0], [0], [1], [0, 0, 1, 1], [], []>} : vector<2x256xbf16>, vector<256x256xbf16>, vector<2x256xf32> -> vector<2x256xf32>
    %c0_16 = arith.constant 0 : index
    %c0_17 = arith.constant 0 : index
    %49 = vector.load %arg4[%c0_16, %c0_17] : memref<1x256xf32, #tpu.memory_space<vmem>>, vector<1x256xf32>
    %50 = vector.broadcast %49 : vector<1x256xf32> to vector<2x256xf32>
    %51 = arith.addf %48, %50 : vector<2x256xf32>
    %c0_18 = arith.constant 0 : index
    %c0_19 = arith.constant 0 : index
    %52 = vector.load %arg5[%c0_18, %c0_19] : memref<2x128xf32, #tpu.memory_space<vmem>>, vector<2x128xf32>
    %53 = vector.extract_strided_slice %51 {offsets = [0, 0], sizes = [2, 128], strides = [1, 1]} : vector<2x256xf32> to vector<2x128xf32>
    %54 = arith.mulf %52, %53 : vector<2x128xf32>
    %55 = vector.extract_strided_slice %51 {offsets = [0, 128], sizes = [2, 128], strides = [1, 1]} : vector<2x256xf32> to vector<2x128xf32>
    %56 = arith.addf %54, %55 : vector<2x128xf32>
    %c0_20 = arith.constant 0 : index
    %c0_21 = arith.constant 0 : index
    %57 = vector.load %arg6[%c0_20, %c0_21] : memref<2x128xf32, #tpu.memory_space<vmem>>, vector<2x128xf32>
    tpu.vector_store %arg6[%c0_20, %c0_21], %56 {strides = array<i32>} : memref<2x128xf32, #tpu.memory_space<vmem>>, vector<2x128xf32>,
    return
  }
}

</mosaic_0001>

<bundles_post_ra>
// kernel: _run.1
= control target key start
LH: loop header
LB: loop body
LE: loop exit
PB: predicated region body
PF: predicated region fallthrough
CT: control target
= control target key end

     0   :  { %11 = vsyncpa [#allocation3], 0  ;;  %s3048_s24 = smov [#allocation2]   ;;  %s3049_s26 = smov 128   ;;  %s3375_s0 = inlined_call_operand.vmem [shape: f32[2,1536], index: 0, kind: input, shape index: {}]   ;;  %s3376_s1 = inlined_call_operand.hbm [shape: bf16[1536,256], index: 1, kind: input, shape index: {}]   ;;  %s3377_s2 = inlined_call_operand.vmem [shape: f32[3,256], index: 2, kind: input, shape index: {}]   ;;  %s3378_s3 = inlined_call_operand.vmem [shape: bf16[256,256], index: 3, kind: input, shape index: {}]   ;;  %s3379_s4 = inlined_call_operand.vmem [shape: f32[1,256], index: 4, kind: input, shape index: {}]   ;;  %s3380_s5 = inlined_call_operand.vmem [shape: f32[2,128], index: 5, kind: input, shape index: {}]   ;;  %s3381_s6 = inlined_call_operand.vmem [shape: f32[2,128], index: 6, kind: output, shape index: {}]  }
   0x1   :  { %s18_s23 = sshll.u32 %s3376_s1, 4  ;;  %s20_s25 = sshll.u32 %s3048_s24, 4  ;;  %s19_s23 = int_to_ptr.hbm [resolvable:$true] %s18_s23  ;;  %s21_s25 = int_to_ptr.vmem [resolvable:$true] %s20_s25 }
   0x2   :  { %s3050_s27 = smov 8  }
   0x3   :  { %26 = dma.hbm_to_vmem [thread:$0]  %s19_s23, 24576, %s21_s25, [#allocation3], %s3049_s26, %s3049_s26, %s3050_s27  }
   0x4   :  { %3046 = dma.done.wait [#allocation3], 24576  }
   0x5   :  { %3047 = vsyncadd [#allocation3], 4294942720  ;;  %v1952_v0 = vld [vmem:[#allocation2 + $0x70] sm:$0xf]  ;;  %v2807_v1 = vld [vmem:[#allocation2 + $0x74] sm:$0xf0] }
   0x6   :  { %v2016_v2 = vld [vmem:[#allocation2 + $0xf0] sm:$0xf]  ;;  %v1953_v3 = vor.u32 %v2807_v1, %v1952_v0  ;;  %v2823_v4 = vld [vmem:[#allocation2 + $0xf4] sm:$0xf0]  ;;  %v1944_v11 = vld [vmem:[#allocation2 + $0x60] sm:$0xf] }
   0x7   :  { %v2080_v5 = vld [vmem:[#allocation2 + $0x170] sm:$0xf]  ;;  %v2839_v6 = vld [vmem:[#allocation2 + $0x174] sm:$0xf0]  ;;  %v2017_v7 = vor.u32 %v2823_v4, %v2016_v2  ;;  %v2805_v13 = vld [vmem:[#allocation2 + $0x64] sm:$0xf0] }
   0x8   :  { %v2081_v8 = vor.u32 %v2839_v6, %v2080_v5  ;;  %v2144_v9 = vld [vmem:[#allocation2 + $0x1f0] sm:$0xf]  ;;  %v2855_v10 = vld [vmem:[#allocation2 + $0x1f4] sm:$0xf0]  ;;  %1237 = vmatpush.bf16.msra.mxu0 %v1953_v3  ;;  %v2008_v14 = vld [vmem:[#allocation2 + $0xe0] sm:$0xf]  ;;  %v1945_v16 = vor.u32 %v2805_v13, %v1944_v11 }
   0x9   :  { %v2145_v12 = vor.u32 %v2855_v10, %v2144_v9  ;;  %v2821_v15 = vld [vmem:[#allocation2 + $0xe4] sm:$0xf0]  ;;  %1250 = vmatpush.bf16.msra.mxu1 %v2017_v7  ;;  %v2072_v18 = vld [vmem:[#allocation2 + $0x160] sm:$0xf]  ;;  %v1936_v23 = vld [vmem:[#allocation2 + $0x50] sm:$0xf] }
   0xa   :  { %1263 = vmatpush.bf16.msra.mxu2 %v2081_v8  ;;  %v2009_v17 = vor.u32 %v2821_v15, %v2008_v14  ;;  %v2837_v19 = vld [vmem:[#allocation2 + $0x164] sm:$0xf0]  ;;  %v2136_v20 = vld [vmem:[#allocation2 + $0x1e0] sm:$0xf]  ;;  %v2803_v24 = vld [vmem:[#allocation2 + $0x54] sm:$0xf0] }
   0xb   :  { %1276 = vmatpush.bf16.msra.mxu3 %v2145_v12  ;;  %v2073_v21 = vor.u32 %v2837_v19, %v2072_v18  ;;  %v2853_v22 = vld [vmem:[#allocation2 + $0x1e4] sm:$0xf0]  ;;  %v2000_v26 = vld [vmem:[#allocation2 + $0xd0] sm:$0xf]  ;;  %v2819_v27 = vld [vmem:[#allocation2 + $0xd4] sm:$0xf0]  ;;  %v1937_v29 = vor.u32 %v2803_v24, %v1936_v23 }
   0xc   :  { %v2137_v25 = vor.u32 %v2853_v22, %v2136_v20  ;;  %v2064_v28 = vld [vmem:[#allocation2 + $0x150] sm:$0xf]  ;;  %1238 = vmatpush.bf16.msra.mxu0 %v1945_v16  ;;  %v2835_v30 = vld [vmem:[#allocation2 + $0x154] sm:$0xf0]  ;;  %v2001_v33 = vor.u32 %v2819_v27, %v2000_v26  ;;  %v1928_v35 = vld [vmem:[#allocation2 + $0x40] sm:$0xf] }
   0xd   :  { %v2128_v31 = vld [vmem:[#allocation2 + $0x1d0] sm:$0xf]  ;;  %v2851_v32 = vld [vmem:[#allocation2 + $0x1d4] sm:$0xf0]  ;;  %1251 = vmatpush.bf16.msra.mxu1 %v2009_v17  ;;  %v2065_v34 = vor.u32 %v2835_v30, %v2064_v28  ;;  %v2801_v36 = vld [vmem:[#allocation2 + $0x44] sm:$0xf0] }
   0xe   :  { %1264 = vmatpush.bf16.msra.mxu2 %v2073_v21  ;;  %v1992_v37 = vld [vmem:[#allocation2 + $0xc0] sm:$0xf]  ;;  %v2129_v38 = vor.u32 %v2851_v32, %v2128_v31  ;;  %v2817_v39 = vld [vmem:[#allocation2 + $0xc4] sm:$0xf0]  ;;  %v1929_v44 = vor.u32 %v2801_v36, %v1928_v35  ;;  %v1920_v47 = vld [vmem:[#allocation2 + $0x30] sm:$0xf] }
   0xf   :  { %1277 = vmatpush.bf16.msra.mxu3 %v2137_v25  ;;  %v2056_v40 = vld [vmem:[#allocation2 + $0x140] sm:$0xf]  ;;  %v2833_v41 = vld [vmem:[#allocation2 + $0x144] sm:$0xf0]  ;;  %v1993_v45 = vor.u32 %v2817_v39, %v1992_v37  ;;  %v2799_v48 = vld [vmem:[#allocation2 + $0x34] sm:$0xf0] }
  0x10   :  { %v2120_v42 = vld [vmem:[#allocation2 + $0x1c0] sm:$0xf]  ;;  %v2849_v43 = vld [vmem:[#allocation2 + $0x1c4] sm:$0xf0]  ;;  %1239 = vmatpush.bf16.msra.mxu0 %v1937_v29  ;;  %v2057_v46 = vor.u32 %v2833_v41, %v2056_v40  ;;  %v1984_v49 = vld [vmem:[#allocation2 + $0xb0] sm:$0xf]  ;;  %v1921_v56 = vor.u32 %v2799_v48, %v1920_v47 }
  0x11   :  { %1252 = vmatpush.bf16.msra.mxu1 %v2001_v33  ;;  %v2121_v50 = vor.u32 %v2849_v43, %v2120_v42  ;;  %v2815_v51 = vld [vmem:[#allocation2 + $0xb4] sm:$0xf0]  ;;  %v2048_v52 = vld [vmem:[#allocation2 + $0x130] sm:$0xf]  ;;  %v1912_v59 = vld [vmem:[#allocation2 + $0x20] sm:$0xf] }
  0x12   :  { %1265 = vmatpush.bf16.msra.mxu2 %v2065_v34  ;;  %v2831_v53 = vld [vmem:[#allocation2 + $0x134] sm:$0xf0]  ;;  %v2112_v54 = vld [vmem:[#allocation2 + $0x1b0] sm:$0xf]  ;;  %v1985_v57 = vor.u32 %v2815_v51, %v1984_v49  ;;  %v2797_v60 = vld [vmem:[#allocation2 + $0x24] sm:$0xf0] }
  0x13   :  { %1278 = vmatpush.bf16.msra.mxu3 %v2129_v38  ;;  %v2847_v55 = vld [vmem:[#allocation2 + $0x1b4] sm:$0xf0]  ;;  %v2049_v58 = vor.u32 %v2831_v53, %v2048_v52  ;;  %v1976_v61 = vld [vmem:[#allocation2 + $0xa0] sm:$0xf]  ;;  %v2813_v63 = vld [vmem:[#allocation2 + $0xa4] sm:$0xf0]  ;;  %v1913_v4 = vor.u32 %v2797_v60, %v1912_v59 }
  0x14   :  { %1240 = vmatpush.bf16.msra.mxu0 %v1929_v44  ;;  %v2113_v62 = vor.u32 %v2847_v55, %v2112_v54  ;;  %v2040_v0 = vld [vmem:[#allocation2 + $0x120] sm:$0xf]  ;;  %v2829_v1 = vld [vmem:[#allocation2 + $0x124] sm:$0xf0]  ;;  %v1977_v5 = vor.u32 %v2813_v63, %v1976_v61  ;;  %v1904_v7 = vld [vmem:[#allocation2 + $0x10] sm:$0xf] }
  0x15   :  { %1253 = vmatpush.bf16.msra.mxu1 %v1993_v45  ;;  %v2104_v2 = vld [vmem:[#allocation2 + $0x1a0] sm:$0xf]  ;;  %v2845_v3 = vld [vmem:[#allocation2 + $0x1a4] sm:$0xf0]  ;;  %v2041_v6 = vor.u32 %v2829_v1, %v2040_v0  ;;  %v2795_v8 = vld [vmem:[#allocation2 + $0x14] sm:$0xf0] }
  0x16   :  { %1266 = vmatpush.bf16.msra.mxu2 %v2057_v46  ;;  %v1968_v9 = vld [vmem:[#allocation2 + $0x90] sm:$0xf]  ;;  %v2105_v10 = vor.u32 %v2845_v3, %v2104_v2  ;;  %v2811_v11 = vld [vmem:[#allocation2 + $0x94] sm:$0xf0]  ;;  %v1905_v16 = vor.u32 %v2795_v8, %v1904_v7  ;;  %v1896_v17 = vld [vmem:[#allocation2] sm:$0xf] }
  0x17   :  { %1279 = vmatpush.bf16.msra.mxu3 %v2121_v50  ;;  %v2032_v12 = vld [vmem:[#allocation2 + $0x110] sm:$0xf]  ;;  %v2827_v13 = vld [vmem:[#allocation2 + $0x114] sm:$0xf0]  ;;  %v2793_v18 = vld [vmem:[#allocation2 + $0x4] sm:$0xf0]  ;;  %v1969_v19 = vor.u32 %v2811_v11, %v1968_v9 }
  0x18   :  { %1241 = vmatpush.bf16.msra.mxu0 %v1921_v56  ;;  %v2096_v14 = vld [vmem:[#allocation2 + $0x190] sm:$0xf]  ;;  %v2843_v15 = vld [vmem:[#allocation2 + $0x194] sm:$0xf0]  ;;  %v2033_v20 = vor.u32 %v2827_v13, %v2032_v12  ;;  %v1960_v21 = vld [vmem:[#allocation2 + $0x80] sm:$0xf]  ;;  %v1897_v31 = vor.u32 %v2793_v18, %v1896_v17 }
  0x19   :  { %1254 = vmatpush.bf16.msra.mxu1 %v1985_v57  ;;  %v2809_v22 = vld [vmem:[#allocation2 + $0x84] sm:$0xf0]  ;;  %v2024_v23 = vld [vmem:[#allocation2 + $0x100] sm:$0xf]  ;;  %v2097_v24 = vor.u32 %v2843_v15, %v2096_v14  ;;  %v2208_v28 = vld [vmem:[#allocation2 + $0x270] sm:$0xf] }
  0x1a   :  { %1267 = vmatpush.bf16.msra.mxu2 %v2049_v58  ;;  %v2825_v25 = vld [vmem:[#allocation2 + $0x104] sm:$0xf0]  ;;  %v2088_v26 = vld [vmem:[#allocation2 + $0x180] sm:$0xf]  ;;  %v2871_v29 = vld [vmem:[#allocation2 + $0x274] sm:$0xf0]  ;;  %v1961_v35 = vor.u32 %v2809_v22, %v1960_v21 }
  0x1b   :  { %1280 = vmatpush.bf16.msra.mxu3 %v2113_v62  ;;  %v2841_v27 = vld [vmem:[#allocation2 + $0x184] sm:$0xf0]  ;;  %v2272_v30 = vld [vmem:[#allocation2 + $0x2f0] sm:$0xf]  ;;  %v2887_v32 = vld [vmem:[#allocation2 + $0x2f4] sm:$0xf0]  ;;  %v2025_v36 = vor.u32 %v2825_v25, %v2024_v23  ;;  %v2209_v40 = vor.u32 %v2871_v29, %v2208_v28 }
  0x1c   :  { %1242 = vmatpush.bf16.msra.mxu0 %v1913_v4  ;;  %v2336_v33 = vld [vmem:[#allocation2 + $0x370] sm:$0xf]  ;;  %v2903_v34 = vld [vmem:[#allocation2 + $0x374] sm:$0xf0]  ;;  %v2089_v39 = vor.u32 %v2841_v27, %v2088_v26  ;;  %v2273_v41 = vor.u32 %v2887_v32, %v2272_v30  ;;  %v2200_v43 = vld [vmem:[#allocation2 + $0x260] sm:$0xf] }
  0x1d   :  { %1255 = vmatpush.bf16.msra.mxu1 %v1977_v5  ;;  %v2400_v37 = vld [vmem:[#allocation2 + $0x3f0] sm:$0xf]  ;;  %v2919_v38 = vld [vmem:[#allocation2 + $0x3f4] sm:$0xf0]  ;;  %v2337_v42 = vor.u32 %v2903_v34, %v2336_v33  ;;  %v2869_v44 = vld [vmem:[#allocation2 + $0x264] sm:$0xf0] }
  0x1e   :  { %1268 = vmatpush.bf16.msra.mxu2 %v2041_v6  ;;  %v2264_v45 = vld [vmem:[#allocation2 + $0x2e0] sm:$0xf]  ;;  %v2401_v46 = vor.u32 %v2919_v38, %v2400_v37  ;;  %v2885_v47 = vld [vmem:[#allocation2 + $0x2e4] sm:$0xf0]  ;;  %v2201_v52 = vor.u32 %v2869_v44, %v2200_v43  ;;  %v2192_v53 = vld [vmem:[#allocation2 + $0x250] sm:$0xf] }
  0x1f   :  { %1281 = vmatpush.bf16.msra.mxu3 %v2105_v10  ;;  %v2328_v48 = vld [vmem:[#allocation2 + $0x360] sm:$0xf]  ;;  %v2901_v49 = vld [vmem:[#allocation2 + $0x364] sm:$0xf0]  ;;  %v2867_v54 = vld [vmem:[#allocation2 + $0x254] sm:$0xf0]  ;;  %v2265_v55 = vor.u32 %v2885_v47, %v2264_v45 }
  0x20   :  { %1243 = vmatpush.bf16.msra.mxu0 %v1905_v16  ;;  %v2392_v50 = vld [vmem:[#allocation2 + $0x3e0] sm:$0xf]  ;;  %v2917_v51 = vld [vmem:[#allocation2 + $0x3e4] sm:$0xf0]  ;;  %v2329_v56 = vor.u32 %v2901_v49, %v2328_v48  ;;  %v2256_v57 = vld [vmem:[#allocation2 + $0x2d0] sm:$0xf]  ;;  %v2193_v1 = vor.u32 %v2867_v54, %v2192_v53 }
  0x21   :  { %1256 = vmatpush.bf16.msra.mxu1 %v1969_v19  ;;  %v2883_v58 = vld [vmem:[#allocation2 + $0x2d4] sm:$0xf0]  ;;  %v2393_v60 = vor.u32 %v2917_v51, %v2392_v50  ;;  %v2320_v61 = vld [vmem:[#allocation2 + $0x350] sm:$0xf]  ;;  %v2184_v2 = vld [vmem:[#allocation2 + $0x240] sm:$0xf] }
  0x22   :  { %1269 = vmatpush.bf16.msra.mxu2 %v2033_v20  ;;  %v39_v59 = vld [vmem:[%s3375_s0] sm:$0xff]  ;;  %v2384_v63 = vld [vmem:[#allocation2 + $0x3d0] sm:$0xf]  ;;  %v2257_v3 = vor.u32 %v2883_v58, %v2256_v57  ;;  %v2865_v5 = vld [vmem:[#allocation2 + $0x244] sm:$0xf0]  ;;  %vm1566_vm0 = vcmask 523264  }
  0x23   :  { %1282 = vmatpush.bf16.msra.mxu3 %v2097_v24  ;;  %v2899_v62 = vld [vmem:[#allocation2 + $0x354] sm:$0xf0]  ;;  %45 = vst [vmem:[#allocation1] ss:$4 sm:$0xff] %v39_v59  ;;  %v2248_v6 = vld [vmem:[#allocation2 + $0x2c0] sm:$0xf]  ;;  %v2185_v15 = vor.u32 %v2865_v5, %v2184_v2 }
  0x24   :  { %1244 = vmatpush.bf16.msra.mxu0 %v1897_v31  ;;  %v2915_v0 = vld [vmem:[#allocation2 + $0x3d4] sm:$0xf0]  ;;  %v2321_v4 = vor.u32 %v2899_v62, %v2320_v61  ;;  %v2881_v7 = vld [vmem:[#allocation2 + $0x2c4] sm:$0xf0]  ;;  %v2312_v9 = vld [vmem:[#allocation2 + $0x340] sm:$0xf] }
  0x25   :  { %1257 = vmatpush.bf16.msra.mxu1 %v1961_v35  ;;  %v2385_v8 = vor.u32 %v2915_v0, %v2384_v63  ;;  %v2897_v10 = vld [vmem:[#allocation2 + $0x344] sm:$0xf0]  ;;  %v2376_v11 = vld [vmem:[#allocation2 + $0x3c0] sm:$0xf]  ;;  %v2176_v13 = vld [vmem:[#allocation2 + $0x230] sm:$0xf]  ;;  %v2249_v21 = vor.u32 %v2881_v7, %v2248_v6 }
  0x26   :  { %1270 = vmatpush.bf16.msra.mxu2 %v2025_v36  ;;  %v2913_v12 = vld [vmem:[#allocation2 + $0x3c4] sm:$0xf0]  ;;  %v2863_v14 = vld [vmem:[#allocation2 + $0x234] sm:$0xf0]  ;;  %v2240_v16 = vld [vmem:[#allocation2 + $0x2b0] sm:$0xf]  ;;  %v2313_v22 = vor.u32 %v2897_v10, %v2312_v9 }
  0x27   :  { %1283 = vmatpush.bf16.msra.mxu3 %v2089_v39  ;;  %v2879_v17 = vld [vmem:[#allocation2 + $0x2b4] sm:$0xf0]  ;;  %v2304_v18 = vld [vmem:[#allocation2 + $0x330] sm:$0xf]  ;;  %v41_v20 = vld [vmem:[%s3375_s0 + $0x10] sm:$0xff]  ;;  %v2377_v25 = vor.u32 %v2913_v12, %v2376_v11  ;;  %v2177_v34 = vor.u32 %v2863_v14, %v2176_v13 }
  0x28   :  { %1289 = vmatpush.bf16.msrb.mxu0 %v2209_v40  ;;  %v2895_v19 = vld [vmem:[#allocation2 + $0x334] sm:$0xf0]  ;;  %v2368_v30 = vld [vmem:[#allocation2 + $0x3b0] sm:$0xf]  ;;  %v2241_v35 = vor.u32 %v2879_v17, %v2240_v16  ;;  %v2168_v37 = vld [vmem:[#allocation2 + $0x220] sm:$0xf] }
  0x29   :  { %1302 = vmatpush.bf16.msrb.mxu1 %v2273_v41  ;;  %v2911_v31 = vld [vmem:[#allocation2 + $0x3b4] sm:$0xf0]  ;;  %v2305_v36 = vor.u32 %v2895_v19, %v2304_v18  ;;  %v2861_v38 = vld [vmem:[#allocation2 + $0x224] sm:$0xf0]  ;;  %v2232_v39 = vld [vmem:[#allocation2 + $0x2a0] sm:$0xf] }
  0x2a   :  { %1315 = vmatpush.bf16.msrb.mxu2 %v2337_v42  ;;  %v50_v23 = vld.sshfl [vmem:[#allocation1 + $0x10] sm:$0xff pattern:$0x73625140]  ;;  %v48_v24 = vld.sshfl [vmem:[#allocation1] sm:$0xff pattern:$0x73625140]  ;;  %v2369_v40 = vor.u32 %v2911_v31, %v2368_v30 }
  0x2b   :  { %1328 = vmatpush.bf16.msrb.mxu3 %v2401_v46  ;;  %v3096_v26 = vpack.c.bf16 %v50_v23, %v50_v23  ;;  %v3098_v27 = vpack.c.bf16 %v48_v24, %v48_v24  ;;  %v51_v28 = vld.sshfl [vmem:[#allocation1 + $0x18] sm:$0xff pattern:$0x73625140]  ;;  %v49_v29 = vld.sshfl [vmem:[#allocation1 + $0x8] sm:$0xff pattern:$0x73625140]  ;;  %v2169_v46 = vor.u32 %v2861_v38, %v2168_v37 }
  0x2c   :  { %1290 = vmatpush.bf16.msrb.mxu0 %v2201_v52  ;;  %v3100_v32 = vpack.c.bf16 %v51_v28, %v51_v28  ;;  %56 = vst [vmem:[#allocation1] ss:$4 sm:$0xff] %v41_v20  ;;  %v3102_v33 = vpack.c.bf16 %v49_v29, %v49_v29  ;;  %v2877_v41 = vld [vmem:[#allocation2 + $0x2a4] sm:$0xf0]  ;;  %v2296_v42 = vld [vmem:[#allocation2 + $0x320] sm:$0xf] }
  0x2d   :  { %1303 = vmatpush.bf16.msrb.mxu1 %v2265_v55  ;;  %1271 = vmatmul.bf16.vlgmr.msra.gmra.mxu2 %v3096_v26  ;;  %v2893_v43 = vld [vmem:[#allocation2 + $0x324] sm:$0xf0]  ;;  %v2360_v44 = vld [vmem:[#allocation2 + $0x3a0] sm:$0xf]  ;;  %v2160_v47 = vld [vmem:[#allocation2 + $0x210] sm:$0xf]  ;;  %v2233_v48 = vor.u32 %v2877_v41, %v2232_v39 }
  0x2e   :  { %1316 = vmatpush.bf16.msrb.mxu2 %v2329_v56  ;;  %1245 = vmatmul.bf16.vlgmr.msra.gmra.mxu0 %v3098_v27  ;;  %v2909_v45 = vld [vmem:[#allocation2 + $0x3a4] sm:$0xf0]  ;;  %v2297_v49 = vor.u32 %v2893_v43, %v2296_v42  ;;  %v2859_v50 = vld [vmem:[#allocation2 + $0x214] sm:$0xf0]  ;;  %v2224_v51 = vld [vmem:[#allocation2 + $0x290] sm:$0xf] }
  0x2f   :  { %1329 = vmatpush.bf16.msrb.mxu3 %v2393_v60  ;;  %1258 = vmatmul.bf16.vlgmr.msra.gmra.mxu1 %v3102_v33  ;;  %v2875_v52 = vld [vmem:[#allocation2 + $0x294] sm:$0xf0]  ;;  %v2361_v53 = vor.u32 %v2909_v45, %v2360_v44  ;;  %v2288_v54 = vld [vmem:[#allocation2 + $0x310] sm:$0xf]  ;;  %v40_v56 = vld [vmem:[%s3375_s0 + $0x8] sm:$0xff]  ;;  %v2161_v59 = vor.u32 %v2859_v50, %v2160_v47  ;;  %s3051_s0 = smov 64  }
  0x30   :  { %1291 = vmatpush.bf16.msrb.mxu0 %v2193_v1  ;;  %1284 = vmatmul.bf16.vlgmr.msra.gmra.mxu3 %v3100_v32  ;;  %v2891_v55 = vld [vmem:[#allocation2 + $0x314] sm:$0xf0]  ;;  %v2352_v57 = vld [vmem:[#allocation2 + $0x390] sm:$0xf]  ;;  %47 = vst [vmem:[#allocation1 + $0x20] ss:$4 sm:$0xff] %v40_v56  ;;  %v2225_v63 = vor.u32 %v2875_v52, %v2224_v51 }
  0x31   :  { %1304 = vmatpush.bf16.msrb.mxu1 %v2257_v3  ;;  %v2907_v58 = vld [vmem:[#allocation2 + $0x394] sm:$0xf0]  ;;  %v2152_v60 = vld [vmem:[#allocation2 + $0x200] sm:$0xf]  ;;  %v2857_v61 = vld [vmem:[#allocation2 + $0x204] sm:$0xf0]  ;;  %v2289_v0 = vor.u32 %v2891_v55, %v2288_v54 }
  0x32   :  { %1317 = vmatpush.bf16.msrb.mxu2 %v2321_v4  ;;  %v2216_v62 = vld [vmem:[#allocation2 + $0x280] sm:$0xf]  ;;  %v2873_v1 = vld [vmem:[#allocation2 + $0x284] sm:$0xf0]  ;;  %v2353_v4 = vor.u32 %v2907_v58, %v2352_v57  ;;  %v2464_v7 = vld [vmem:[#allocation2 + $0x470] sm:$0xf]  ;;  %v2153_v11 = vor.u32 %v2857_v61, %v2152_v60 }
  0x33   :  { %1330 = vmatpush.bf16.msrb.mxu3 %v2385_v8  ;;  %v2280_v2 = vld [vmem:[#allocation2 + $0x300] sm:$0xf]  ;;  %v2889_v3 = vld [vmem:[#allocation2 + $0x304] sm:$0xf0]  ;;  %v2935_v8 = vld [vmem:[#allocation2 + $0x474] sm:$0xf0] }
  0x34   :  { %1292 = vmatpush.bf16.msrb.mxu0 %v2185_v15  ;;  %v2344_v5 = vld [vmem:[#allocation2 + $0x380] sm:$0xf]  ;;  %v2905_v6 = vld [vmem:[#allocation2 + $0x384] sm:$0xf0]  ;;  %v2528_v9 = vld [vmem:[#allocation2 + $0x4f0] sm:$0xf]  ;;  %v2217_v15 = vor.u32 %v2873_v1, %v2216_v62  ;;  %v2281_v16 = vor.u32 %v2889_v3, %v2280_v2 }
  0x35   :  { %1305 = vmatpush.bf16.msrb.mxu1 %v2249_v21  ;;  %v2951_v10 = vld [vmem:[#allocation2 + $0x4f4] sm:$0xf0]  ;;  %v2592_v12 = vld [vmem:[#allocation2 + $0x570] sm:$0xf]  ;;  %v2456_v18 = vld [vmem:[#allocation2 + $0x460] sm:$0xf]  ;;  %v2345_v20 = vor.u32 %v2905_v6, %v2344_v5  ;;  %v2465_v21 = vor.u32 %v2935_v8, %v2464_v7 }
  0x36   :  { %1318 = vmatpush.bf16.msrb.mxu2 %v2313_v22  ;;  %v2967_v13 = vld [vmem:[#allocation2 + $0x574] sm:$0xf0]  ;;  %v2656_v14 = vld [vmem:[#allocation2 + $0x5f0] sm:$0xf]  ;;  %v2933_v19 = vld [vmem:[#allocation2 + $0x464] sm:$0xf0] }
  0x37   :  { %1331 = vmatpush.bf16.msrb.mxu3 %v2377_v25  ;;  %v2983_v17 = vld [vmem:[#allocation2 + $0x5f4] sm:$0xf0]  ;;  %v2520_v22 = vld [vmem:[#allocation2 + $0x4e0] sm:$0xf]  ;;  %v2529_v25 = vor.u32 %v2951_v10, %v2528_v9  ;;  %v2593_v28 = vor.u32 %v2967_v13, %v2592_v12  ;;  %v2981_v39 = vld [vmem:[#allocation2 + $0x5e4] sm:$0xf0]  ;;  %v2457_v42 = vor.u32 %v2933_v19, %v2456_v18 }
  0x38   :  { %1293 = vmatpush.bf16.msrb.mxu0 %v2177_v34  ;;  %v54_v23 = vld.sshfl [vmem:[#allocation1 + $0x30] sm:$0xff pattern:$0x73625140]  ;;  %v52_v24 = vld.sshfl [vmem:[#allocation1 + $0x20] sm:$0xff pattern:$0x73625140]  ;;  %v2657_v31 = vor.u32 %v2983_v17, %v2656_v14 }
  0x39   :  { %1306 = vmatpush.bf16.msrb.mxu1 %v2241_v35  ;;  %v55_v29 = vld.sshfl [vmem:[#allocation1 + $0x38] sm:$0xff pattern:$0x73625140]  ;;  %v53_v30 = vld.sshfl [vmem:[#allocation1 + $0x28] sm:$0xff pattern:$0x73625140]  ;;  %v3111_v37 = vpack.c.bf16 %v54_v23, %v54_v23 }
  0x3a   :  { %1319 = vmatpush.bf16.msrb.mxu2 %v2305_v36  ;;  %v2949_v34 = vld [vmem:[#allocation2 + $0x4e4] sm:$0xf0]  ;;  %v2584_v35 = vld [vmem:[#allocation2 + $0x560] sm:$0xf]  ;;  %v3115_v41 = vpack.c.bf16 %v55_v29, %v55_v29  ;;  %v3117_v43 = vpack.c.bf16 %v53_v30, %v53_v30  ;;  %v2931_v47 = vld [vmem:[#allocation2 + $0x454] sm:$0xf0] }
  0x3b   :  { %1332 = vmatpush.bf16.msrb.mxu3 %v2369_v40  ;;  %v2965_v36 = vld [vmem:[#allocation2 + $0x564] sm:$0xf0]  ;;  %v2648_v38 = vld [vmem:[#allocation2 + $0x5e0] sm:$0xf]  ;;  %v3113_v40 = vpack.c.bf16 %v52_v24, %v52_v24  ;;  %v2521_v44 = vor.u32 %v2949_v34, %v2520_v22  ;;  %v2947_v50 = vld [vmem:[#allocation2 + $0x4d4] sm:$0xf0] }
  0x3c   :  { %1294 = vmatpush.bf16.msrb.mxu0 %v2169_v46  ;;  %v2585_v45 = vor.u32 %v2965_v36, %v2584_v35  ;;  %v2448_v46 = vld [vmem:[#allocation2 + $0x450] sm:$0xf]  ;;  %v2963_v52 = vld [vmem:[#allocation2 + $0x554] sm:$0xf0]  ;;  %v2440_v58 = vld [vmem:[#allocation2 + $0x440] sm:$0xf] }
  0x3d   :  { %1307 = vmatpush.bf16.msrb.mxu1 %v2233_v48  ;;  %v2512_v48 = vld [vmem:[#allocation2 + $0x4d0] sm:$0xf]  ;;  %v2979_v54 = vld [vmem:[#allocation2 + $0x5d4] sm:$0xf0]  ;;  %v2449_v55 = vor.u32 %v2931_v47, %v2448_v46  ;;  %v2504_v60 = vld [vmem:[#allocation2 + $0x4c0] sm:$0xf] }
  0x3e   :  { %1320 = vmatpush.bf16.msrb.mxu2 %v2297_v49  ;;  %v2649_v49 = vor.u32 %v2981_v39, %v2648_v38  ;;  %v2576_v51 = vld [vmem:[#allocation2 + $0x550] sm:$0xf]  ;;  %v2513_v56 = vor.u32 %v2947_v50, %v2512_v48  ;;  %v2945_v62 = vld [vmem:[#allocation2 + $0x4c4] sm:$0xf0]  ;;  %v2632_v1 = vld [vmem:[#allocation2 + $0x5c0] sm:$0xf] }
  0x3f   :  { %1333 = vmatpush.bf16.msrb.mxu3 %v2361_v53  ;;  %v2640_v53 = vld [vmem:[#allocation2 + $0x5d0] sm:$0xf]  ;;  %v2577_v57 = vor.u32 %v2963_v52, %v2576_v51  ;;  %v2977_v2 = vld [vmem:[#allocation2 + $0x5c4] sm:$0xf0]  ;;  %v2927_v7 = vld [vmem:[#allocation2 + $0x434] sm:$0xf0] }
  0x40   :  { %1295 = vmatpush.bf16.msrb.mxu0 %v2161_v59  ;;  %v2929_v59 = vld [vmem:[#allocation2 + $0x444] sm:$0xf0]  ;;  %v2641_v61 = vor.u32 %v2979_v54, %v2640_v53  ;;  %v2432_v6 = vld [vmem:[#allocation2 + $0x430] sm:$0xf]  ;;  %v2633_v9 = vor.u32 %v2977_v2, %v2632_v1  ;;  %v2943_v10 = vld [vmem:[#allocation2 + $0x4b4] sm:$0xf0] }
  0x41   :  { %1308 = vmatpush.bf16.msrb.mxu1 %v2225_v63  ;;  %v2568_v63 = vld [vmem:[#allocation2 + $0x540] sm:$0xf]  ;;  %v2441_v3 = vor.u32 %v2929_v59, %v2440_v58  ;;  %v2496_v8 = vld [vmem:[#allocation2 + $0x4b0] sm:$0xf]  ;;  %v2959_v12 = vld [vmem:[#allocation2 + $0x534] sm:$0xf0] }
  0x42   :  { %1321 = vmatpush.bf16.msrb.mxu2 %v2289_v0  ;;  %v2961_v0 = vld [vmem:[#allocation2 + $0x544] sm:$0xf0]  ;;  %v2624_v13 = vld [vmem:[#allocation2 + $0x5b0] sm:$0xf]  ;;  %v2975_v14 = vld [vmem:[#allocation2 + $0x5b4] sm:$0xf0] }
  0x43   :  { %1334 = vmatpush.bf16.msrb.mxu3 %v2353_v4  ;;  %v2505_v4 = vor.u32 %v2945_v62, %v2504_v60  ;;  %v2569_v5 = vor.u32 %v2961_v0, %v2568_v63  ;;  %v2424_v18 = vld [vmem:[#allocation2 + $0x420] sm:$0xf]  ;;  %v2925_v19 = vld [vmem:[#allocation2 + $0x424] sm:$0xf0]  ;;  %v2416_v34 = vld [vmem:[#allocation2 + $0x410] sm:$0xf] }
  0x44   :  { %1296 = vmatpush.bf16.msrb.mxu0 %v2153_v11  ;;  %v2560_v11 = vld [vmem:[#allocation2 + $0x530] sm:$0xf]  ;;  %v2941_v22 = vld [vmem:[#allocation2 + $0x4a4] sm:$0xf0]  ;;  %v2552_v23 = vld [vmem:[#allocation2 + $0x520] sm:$0xf]  ;;  %v2425_v29 = vor.u32 %v2925_v19, %v2424_v18 }
  0x45   :  { %1309 = vmatpush.bf16.msrb.mxu1 %v2217_v15  ;;  %v2433_v15 = vor.u32 %v2927_v7, %v2432_v6  ;;  %v2561_v17 = vor.u32 %v2959_v12, %v2560_v11  ;;  %v2957_v24 = vld [vmem:[#allocation2 + $0x524] sm:$0xf0]  ;;  %v2923_v35 = vld [vmem:[#allocation2 + $0x414] sm:$0xf0]  ;;  %v2480_v36 = vld [vmem:[#allocation2 + $0x490] sm:$0xf] }
  0x46   :  { %1322 = vmatpush.bf16.msrb.mxu2 %v2281_v16  ;;  %v2497_v16 = vor.u32 %v2943_v10, %v2496_v8  ;;  %v2939_v39 = vld [vmem:[#allocation2 + $0x494] sm:$0xf0]  ;;  %v2408_v47 = vld [vmem:[#allocation2 + $0x400] sm:$0xf]  ;;  %v2417_v48 = vor.u32 %v2923_v35, %v2416_v34  ;;  %v2937_v51 = vld [vmem:[#allocation2 + $0x484] sm:$0xf0] }
  0x47   :  { %1335 = vmatpush.bf16.msrb.mxu3 %v2345_v20  ;;  %1297 = vmatmul.bf16.vlgmr.msrb.gmra.mxu0 %v3113_v40  ;;  %v2488_v20 = vld [vmem:[#allocation2 + $0x4a0] sm:$0xf]  ;;  %v2971_v46 = vld [vmem:[#allocation2 + $0x594] sm:$0xf0]  ;;  %v2481_v52 = vor.u32 %v2939_v39, %v2480_v36  ;;  %v2969_v58 = vld [vmem:[#allocation2 + $0x584] sm:$0xf0] }
  0x48   :  { %1341 = vmatpush.bf16.msra.mxu0 %v2465_v21  ;;  %1310 = vmatmul.bf16.vlgmr.msrb.gmra.mxu1 %v3117_v43  ;;  %v2625_v21 = vor.u32 %v2975_v14, %v2624_v13  ;;  %v2489_v30 = vor.u32 %v2941_v22, %v2488_v20  ;;  %v2472_v50 = vld [vmem:[#allocation2 + $0x480] sm:$0xf]  ;;  %v2806_v59 = vld [vmem:[#allocation2 + $0x74] sm:$0xf]  ;;  %v1954_v60 = vld [vmem:[#allocation2 + $0x78] sm:$0xf0] }
  0x49   :  { %1354 = vmatpush.bf16.msra.mxu1 %v2529_v25  ;;  %1323 = vmatmul.bf16.vlgmr.msrb.gmra.mxu2 %v3111_v37  ;;  %v2616_v25 = vld [vmem:[#allocation2 + $0x5a0] sm:$0xf]  ;;  %v2018_v62 = vld [vmem:[#allocation2 + $0xf8] sm:$0xf0]  ;;  %v2838_v63 = vld [vmem:[#allocation2 + $0x174] sm:$0xf] }
  0x4a   :  { %1367 = vmatpush.bf16.msra.mxu2 %v2593_v28  ;;  %1336 = vmatmul.bf16.vlgmr.msrb.gmra.mxu3 %v3115_v41  ;;  %v2973_v28 = vld [vmem:[#allocation2 + $0x5a4] sm:$0xf0]  ;;  %v2536_v54 = vld [vmem:[#allocation2 + $0x500] sm:$0xf]  ;;  %v2082_v1 = vld [vmem:[#allocation2 + $0x178] sm:$0xf0] }
  0x4b   :  { %1380 = vmatpush.bf16.msra.mxu3 %v2657_v31  ;;  %v2553_v31 = vor.u32 %v2957_v24, %v2552_v23  ;;  %v2617_v38 = vor.u32 %v2973_v28, %v2616_v25  ;;  %v2854_v2 = vld [vmem:[#allocation2 + $0x1f4] sm:$0xf]  ;;  %v57_v6 = vld.sshfl [vmem:[#allocation1] sm:$0xff pattern:$0x73625140]  ;;  %v2085_v13 = vor.u32 %v2838_v63, %v2082_v1 }
  0x4c   :  { %1342 = vmatpush.bf16.msra.mxu0 %v2457_v42  ;;  %v2544_v42 = vld [vmem:[#allocation2 + $0x510] sm:$0xf]  ;;  %v59_v7 = vld.sshfl [vmem:[#allocation1 + $0x10] sm:$0xff pattern:$0x73625140]  ;;  %v3123_v18 = vpack.c.bf16 %v57_v6, %v57_v6 }
  0x4d   :  { %1355 = vmatpush.bf16.msra.mxu1 %v2521_v44  ;;  %v2955_v44 = vld [vmem:[#allocation2 + $0x514] sm:$0xf0]  ;;  %v58_v10 = vld.sshfl [vmem:[#allocation1 + $0x8] sm:$0xff pattern:$0x73625140]  ;;  %v3125_v22 = vpack.c.bf16 %v59_v7, %v59_v7 }
  0x4e   :  { %1368 = vmatpush.bf16.msra.mxu2 %v2585_v45  ;;  %v2608_v45 = vld [vmem:[#allocation2 + $0x590] sm:$0xf]  ;;  %v2545_v53 = vor.u32 %v2955_v44, %v2544_v42  ;;  %v2804_v14 = vld [vmem:[#allocation2 + $0x64] sm:$0xf]  ;;  %v2010_v19 = vld [vmem:[#allocation2 + $0xe8] sm:$0xf0]  ;;  %v3127_v23 = vpack.c.bf16 %v58_v10, %v58_v10 }
  0x4f   :  { %1381 = vmatpush.bf16.msra.mxu3 %v2649_v49  ;;  %v2921_v49 = vld [vmem:[#allocation2 + $0x404] sm:$0xf0]  ;;  %v60_v11 = vld.sshfl [vmem:[#allocation1 + $0x18] sm:$0xff pattern:$0x73625140] }
  0x50   :  { %1343 = vmatpush.bf16.msra.mxu0 %v2449_v55  ;;  %v2953_v55 = vld [vmem:[#allocation2 + $0x504] sm:$0xf0]  ;;  %v2409_v0 = vor.u32 %v2921_v49, %v2408_v47  ;;  %v2836_v20 = vld [vmem:[#allocation2 + $0x164] sm:$0xf]  ;;  %v2138_v25 = vld [vmem:[#allocation2 + $0x1e8] sm:$0xf0]  ;;  %v3129_v28 = vpack.c.bf16 %v60_v11, %v60_v11 }
  0x51   :  { %1356 = vmatpush.bf16.msra.mxu1 %v2513_v56  ;;  %v2600_v56 = vld [vmem:[#allocation2 + $0x580] sm:$0xf]  ;;  %v2852_v24 = vld [vmem:[#allocation2 + $0x1e4] sm:$0xf]  ;;  %v2802_v34 = vld [vmem:[#allocation2 + $0x54] sm:$0xf] }
  0x52   :  { %1369 = vmatpush.bf16.msra.mxu2 %v2577_v57  ;;  %v2609_v57 = vor.u32 %v2971_v46, %v2608_v45  ;;  %v2601_v8 = vor.u32 %v2969_v58, %v2600_v56  ;;  %v1938_v35 = vld [vmem:[#allocation2 + $0x58] sm:$0xf0]  ;;  %v2818_v36 = vld [vmem:[#allocation2 + $0xd4] sm:$0xf]  ;;  %v2058_v56 = vld [vmem:[#allocation2 + $0x148] sm:$0xf0] }
  0x53   :  { %1382 = vmatpush.bf16.msra.mxu3 %v2641_v61  ;;  %v2822_v61 = vld [vmem:[#allocation2 + $0xf4] sm:$0xf]  ;;  %v2002_v39 = vld [vmem:[#allocation2 + $0xd8] sm:$0xf0]  ;;  %v1941_v47 = vor.u32 %v2802_v34, %v1938_v35  ;;  %v2122_v58 = vld [vmem:[#allocation2 + $0x1c8] sm:$0xf0] }
  0x54   :  { %1344 = vmatpush.bf16.msra.mxu0 %v2441_v3  ;;  %v2146_v3 = vld [vmem:[#allocation2 + $0x1f8] sm:$0xf0]  ;;  %v2021_v12 = vor.u32 %v2822_v61, %v2018_v62  ;;  %v2834_v42 = vld [vmem:[#allocation2 + $0x154] sm:$0xf]  ;;  %v2796_v10 = vld [vmem:[#allocation2 + $0x24] sm:$0xf] }
  0x55   :  { %1357 = vmatpush.bf16.msra.mxu1 %v2505_v4  ;;  %v2473_v4 = vor.u32 %v2937_v51, %v2472_v50  ;;  %v2066_v44 = vld [vmem:[#allocation2 + $0x158] sm:$0xf0]  ;;  %v2850_v45 = vld [vmem:[#allocation2 + $0x1d4] sm:$0xf]  ;;  %v2800_v50 = vld [vmem:[#allocation2 + $0x44] sm:$0xf] }
  0x56   :  { %1370 = vmatpush.bf16.msra.mxu2 %v2569_v5  ;;  %v2537_v5 = vor.u32 %v2953_v55, %v2536_v54  ;;  %v2130_v46 = vld [vmem:[#allocation2 + $0x1d8] sm:$0xf0]  ;;  %v2069_v49 = vor.u32 %v2834_v42, %v2066_v44  ;;  %v1930_v51 = vld [vmem:[#allocation2 + $0x48] sm:$0xf0]  ;;  %v2832_v55 = vld [vmem:[#allocation2 + $0x144] sm:$0xf] }
  0x57   :  { %1383 = vmatpush.bf16.msra.mxu3 %v2633_v9  ;;  %v1957_v9 = vor.u32 %v2806_v59, %v1954_v60  ;;  %v1994_v54 = vld [vmem:[#allocation2 + $0xc8] sm:$0xf0]  ;;  %v1933_v59 = vor.u32 %v2800_v50, %v1930_v51  ;;  %v2061_v61 = vor.u32 %v2832_v55, %v2058_v56  ;;  %v2798_v62 = vld [vmem:[#allocation2 + $0x34] sm:$0xf]  ;;  %v1922_v63 = vld [vmem:[#allocation2 + $0x38] sm:$0xf0] }
  0x58   :  { %1345 = vmatpush.bf16.msra.mxu0 %v2433_v15  ;;  %v1946_v15 = vld [vmem:[#allocation2 + $0x68] sm:$0xf0]  ;;  %v2114_v6 = vld [vmem:[#allocation2 + $0x1b8] sm:$0xf0]  ;;  %v1925_v7 = vor.u32 %v2798_v62, %v1922_v63  ;;  %v2826_v35 = vld [vmem:[#allocation2 + $0x114] sm:$0xf] }
  0x59   :  { %1358 = vmatpush.bf16.msra.mxu1 %v2497_v16  ;;  %v2820_v16 = vld [vmem:[#allocation2 + $0xe4] sm:$0xf]  ;;  %v1914_v11 = vld [vmem:[#allocation2 + $0x28] sm:$0xf0]  ;;  %v1970_v34 = vld [vmem:[#allocation2 + $0x98] sm:$0xf0] }
  0x5a   :  { %1371 = vmatpush.bf16.msra.mxu2 %v2561_v17  ;;  %v2149_v17 = vor.u32 %v2854_v2, %v2146_v3  ;;  %v1986_v2 = vld [vmem:[#allocation2 + $0xb8] sm:$0xf0]  ;;  %v2830_v3 = vld [vmem:[#allocation2 + $0x134] sm:$0xf]  ;;  %v2792_v44 = vld [vmem:[#allocation2 + $0x4] sm:$0xf] }
  0x5b   :  { %1384 = vmatpush.bf16.msra.mxu3 %v2625_v21  ;;  %v2074_v21 = vld [vmem:[#allocation2 + $0x168] sm:$0xf0]  ;;  %v2824_v50 = vld [vmem:[#allocation2 + $0x104] sm:$0xf]  ;;  %v2870_v55 = vld [vmem:[#allocation2 + $0x274] sm:$0xf] }
  0x5c   :  { %1346 = vmatpush.bf16.msra.mxu0 %v2425_v29  ;;  %v1949_v29 = vor.u32 %v2804_v14, %v1946_v15  ;;  %v1978_v14 = vld [vmem:[#allocation2 + $0xa8] sm:$0xf0]  ;;  %v2828_v15 = vld [vmem:[#allocation2 + $0x124] sm:$0xf]  ;;  %v2210_v56 = vld [vmem:[#allocation2 + $0x278] sm:$0xf0] }
  0x5d   :  { %1359 = vmatpush.bf16.msra.mxu1 %v2489_v30  ;;  %v2013_v30 = vor.u32 %v2820_v16, %v2010_v19  ;;  %v2042_v16 = vld [vmem:[#allocation2 + $0x128] sm:$0xf0] }
  0x5e   :  { %1372 = vmatpush.bf16.msra.mxu2 %v2553_v31  ;;  %v2077_v31 = vor.u32 %v2836_v20, %v2074_v21  ;;  %v2106_v19 = vld [vmem:[#allocation2 + $0x1a8] sm:$0xf0]  ;;  %v1917_v20 = vor.u32 %v2796_v10, %v1914_v11  ;;  %v2900_v11 = vld [vmem:[#allocation2 + $0x364] sm:$0xf] }
  0x5f   :  { %1385 = vmatpush.bf16.msra.mxu3 %v2617_v38  ;;  %v2141_v38 = vor.u32 %v2852_v24, %v2138_v25  ;;  %v2045_v24 = vor.u32 %v2828_v15, %v2042_v16  ;;  %v2794_v25 = vld [vmem:[#allocation2 + $0x14] sm:$0xf]  ;;  %v2266_v10 = vld [vmem:[#allocation2 + $0x2e8] sm:$0xf0] }
  0x60   :  { %1347 = vmatpush.bf16.msra.mxu0 %v2417_v48  ;;  %v2005_v48 = vor.u32 %v2818_v36, %v2002_v39  ;;  %v2034_v36 = vld [vmem:[#allocation2 + $0x118] sm:$0xf0] }
  0x61   :  { %1360 = vmatpush.bf16.msra.mxu1 %v2481_v52  ;;  %v2816_v52 = vld [vmem:[#allocation2 + $0xc4] sm:$0xf]  ;;  %v2098_v39 = vld [vmem:[#allocation2 + $0x198] sm:$0xf0] }
  0x62   :  { %1373 = vmatpush.bf16.msra.mxu2 %v2545_v53  ;;  %v2133_v53 = vor.u32 %v2850_v45, %v2130_v46  ;;  %v1997_v60 = vor.u32 %v2816_v52, %v1994_v54  ;;  %v1898_v45 = vld [vmem:[#allocation2 + $0x8] sm:$0xf0] }
  0x63   :  { %1386 = vmatpush.bf16.msra.mxu3 %v2609_v57  ;;  %v2848_v57 = vld [vmem:[#allocation2 + $0x1c4] sm:$0xf]  ;;  %v2026_v52 = vld [vmem:[#allocation2 + $0x108] sm:$0xf0] }
  0x64   :  { %1348 = vmatpush.bf16.msra.mxu0 %v2409_v0  ;;  %v2814_v0 = vld [vmem:[#allocation2 + $0xb4] sm:$0xf]  ;;  %v2125_v1 = vor.u32 %v2848_v57, %v2122_v58  ;;  %v2090_v54 = vld [vmem:[#allocation2 + $0x188] sm:$0xf0]  ;;  %v1901_v58 = vor.u32 %v2792_v44, %v1898_v45  ;;  %v2029_v63 = vor.u32 %v2824_v50, %v2026_v52  ;;  %v2880_v44 = vld [vmem:[#allocation2 + $0x2c4] sm:$0xf] }
  0x65   :  { %1361 = vmatpush.bf16.msra.mxu1 %v2473_v4  ;;  %v2050_v4 = vld [vmem:[#allocation2 + $0x138] sm:$0xf0]  ;;  %v2886_v57 = vld [vmem:[#allocation2 + $0x2f4] sm:$0xf] }
  0x66   :  { %1374 = vmatpush.bf16.msra.mxu2 %v2537_v5  ;;  %v2846_v5 = vld [vmem:[#allocation2 + $0x1b4] sm:$0xf] }
  0x67   :  { %1387 = vmatpush.bf16.msra.mxu3 %v2601_v8  ;;  %1349 = vmatmul.bf16.vlgmr.msra.gmra.mxu0 %v3123_v18  ;;  %v1989_v8 = vor.u32 %v2814_v0, %v1986_v2  ;;  %v2918_v0 = vld [vmem:[#allocation2 + $0x3f4] sm:$0xf] }
  0x68   :  { %1393 = vmatpush.bf16.msrb.mxu0 %v1957_v9  ;;  %1362 = vmatmul.bf16.vlgmr.msra.gmra.mxu1 %v3127_v23  ;;  %v2053_v9 = vor.u32 %v2830_v3, %v2050_v4  ;;  %v2213_v3 = vor.u32 %v2870_v55, %v2210_v56  ;;  %v2862_v50 = vld [vmem:[#allocation2 + $0x234] sm:$0xf]  ;;  %v2306_v56 = vld [vmem:[#allocation2 + $0x338] sm:$0xf0] }
  0x69   :  { %1406 = vmatpush.bf16.msrb.mxu1 %v2021_v12  ;;  %1375 = vmatmul.bf16.vlgmr.msra.gmra.mxu2 %v3125_v22  ;;  %v2812_v12 = vld [vmem:[#allocation2 + $0xa4] sm:$0xf]  ;;  %v2878_v52 = vld [vmem:[#allocation2 + $0x2b4] sm:$0xf] }
  0x6a   :  { %1419 = vmatpush.bf16.msrb.mxu2 %v2085_v13  ;;  %1388 = vmatmul.bf16.vlgmr.msra.gmra.mxu3 %v3129_v28  ;;  %v2117_v13 = vor.u32 %v2846_v5, %v2114_v6  ;;  %v1981_v21 = vor.u32 %v2812_v12, %v1978_v14  ;;  %v2868_v6 = vld [vmem:[#allocation2 + $0x264] sm:$0xf]  ;;  %v2330_v12 = vld [vmem:[#allocation2 + $0x368] sm:$0xf0]  ;;  %v2894_v55 = vld [vmem:[#allocation2 + $0x334] sm:$0xf] }
  0x6b   :  { %1432 = vmatpush.bf16.msrb.mxu3 %v2149_v17  ;;  %v2844_v17 = vld [vmem:[#allocation2 + $0x1a4] sm:$0xf]  ;;  %v2394_v14 = vld [vmem:[#allocation2 + $0x3e8] sm:$0xf0] }
  0x6c   :  { %1394 = vmatpush.bf16.msrb.mxu0 %v1949_v29  ;;  %v1906_v29 = vld [vmem:[#allocation2 + $0x18] sm:$0xf0] }
  0x6d   :  { %1407 = vmatpush.bf16.msrb.mxu1 %v2013_v30  ;;  %v2810_v30 = vld [vmem:[#allocation2 + $0x94] sm:$0xf]  ;;  %v1909_v42 = vor.u32 %v2794_v25, %v1906_v29  ;;  %v2258_v25 = vld [vmem:[#allocation2 + $0x2d8] sm:$0xf0] }
  0x6e   :  { %1420 = vmatpush.bf16.msrb.mxu2 %v2077_v31  ;;  %v2109_v31 = vor.u32 %v2844_v17, %v2106_v19  ;;  %v1973_v46 = vor.u32 %v2810_v30, %v1970_v34  ;;  %v2333_v17 = vor.u32 %v2900_v11, %v2330_v12  ;;  %v2866_v19 = vld [vmem:[#allocation2 + $0x254] sm:$0xf]  ;;  %v2322_v30 = vld [vmem:[#allocation2 + $0x358] sm:$0xf0] }
  0x6f   :  { %1433 = vmatpush.bf16.msrb.mxu3 %v2141_v38  ;;  %v2842_v38 = vld [vmem:[#allocation2 + $0x194] sm:$0xf]  ;;  %v2386_v34 = vld [vmem:[#allocation2 + $0x3d8] sm:$0xf0] }
  0x70   :  { %1395 = vmatpush.bf16.msrb.mxu0 %v1941_v47  ;;  %v2037_v47 = vor.u32 %v2826_v35, %v2034_v36  ;;  %v2101_v51 = vor.u32 %v2842_v38, %v2098_v39  ;;  %v2898_v29 = vld [vmem:[#allocation2 + $0x354] sm:$0xf]  ;;  %v2864_v39 = vld [vmem:[#allocation2 + $0x244] sm:$0xf]  ;;  %v2162_v11 = vld [vmem:[#allocation2 + $0x218] sm:$0xf0] }
  0x71   :  { %1408 = vmatpush.bf16.msrb.mxu1 %v2005_v48  ;;  %v2808_v48 = vld [vmem:[#allocation2 + $0x84] sm:$0xf]  ;;  %v2325_v38 = vor.u32 %v2898_v29, %v2322_v30  ;;  %v2874_v12 = vld [vmem:[#allocation2 + $0x294] sm:$0xf] }
  0x72   :  { %1421 = vmatpush.bf16.msrb.mxu2 %v2069_v49  ;;  %v1962_v49 = vld [vmem:[#allocation2 + $0x88] sm:$0xf0]  ;;  %v2872_v30 = vld [vmem:[#allocation2 + $0x284] sm:$0xf] }
  0x73   :  { %1434 = vmatpush.bf16.msrb.mxu3 %v2133_v53  ;;  %v2840_v53 = vld [vmem:[#allocation2 + $0x184] sm:$0xf]  ;;  %v1965_v62 = vor.u32 %v2808_v48, %v1962_v49 }
  0x74   :  { %1396 = vmatpush.bf16.msrb.mxu0 %v1933_v59  ;;  %v2274_v59 = vld [vmem:[#allocation2 + $0x2f8] sm:$0xf0]  ;;  %v2093_v2 = vor.u32 %v2840_v53, %v2090_v54  ;;  %v2912_v48 = vld [vmem:[#allocation2 + $0x3c4] sm:$0xf] }
  0x75   :  { %1409 = vmatpush.bf16.msrb.mxu1 %v1997_v60  ;;  %v2902_v60 = vld [vmem:[#allocation2 + $0x374] sm:$0xf]  ;;  %v2277_v4 = vor.u32 %v2886_v57, %v2274_v59  ;;  %v2242_v54 = vld [vmem:[#allocation2 + $0x2b8] sm:$0xf0] }
  0x76   :  { %1422 = vmatpush.bf16.msrb.mxu2 %v2061_v61  ;;  %v2338_v61 = vld [vmem:[#allocation2 + $0x378] sm:$0xf0]  ;;  %v2910_v57 = vld [vmem:[#allocation2 + $0x3b4] sm:$0xf] }
  0x77   :  { %1435 = vmatpush.bf16.msrb.mxu3 %v2125_v1  ;;  %v2402_v1 = vld [vmem:[#allocation2 + $0x3f8] sm:$0xf0]  ;;  %v2341_v5 = vor.u32 %v2902_v60, %v2338_v61  ;;  %v2245_v60 = vor.u32 %v2878_v52, %v2242_v54  ;;  %v2309_v61 = vor.u32 %v2894_v55, %v2306_v56  ;;  %v2932_v54 = vld [vmem:[#allocation2 + $0x464] sm:$0xf]  ;;  %v2458_v55 = vld [vmem:[#allocation2 + $0x468] sm:$0xf0] }
  0x78   :  { %1397 = vmatpush.bf16.msrb.mxu0 %v1925_v7  ;;  %v2202_v7 = vld [vmem:[#allocation2 + $0x268] sm:$0xf0]  ;;  %v2948_v56 = vld [vmem:[#allocation2 + $0x4e4] sm:$0xf] }
  0x79   :  { %1410 = vmatpush.bf16.msrb.mxu1 %v1989_v8  ;;  %v2884_v8 = vld [vmem:[#allocation2 + $0x2e4] sm:$0xf]  ;;  %v2205_v15 = vor.u32 %v2868_v6, %v2202_v7  ;;  %v2362_v6 = vld [vmem:[#allocation2 + $0x3a8] sm:$0xf0] }
  0x7a   :  { %1423 = vmatpush.bf16.msrb.mxu2 %v2053_v9  ;;  %v2405_v9 = vor.u32 %v2918_v0, %v2402_v1  ;;  %v2269_v16 = vor.u32 %v2884_v8, %v2266_v10  ;;  %v2876_v0 = vld [vmem:[#allocation2 + $0x2a4] sm:$0xf]  ;;  %v2858_v10 = vld [vmem:[#allocation2 + $0x214] sm:$0xf] }
  0x7b   :  { %1436 = vmatpush.bf16.msrb.mxu3 %v2117_v13  ;;  %v2916_v13 = vld [vmem:[#allocation2 + $0x3e4] sm:$0xf] }
  0x7c   :  { %1398 = vmatpush.bf16.msrb.mxu0 %v1917_v20  ;;  %v2194_v20 = vld [vmem:[#allocation2 + $0x258] sm:$0xf0] }
  0x7d   :  { %1411 = vmatpush.bf16.msrb.mxu1 %v1981_v21  ;;  %v2882_v21 = vld [vmem:[#allocation2 + $0x2d4] sm:$0xf]  ;;  %v2197_v35 = vor.u32 %v2866_v19, %v2194_v20  ;;  %v2354_v19 = vld [vmem:[#allocation2 + $0x398] sm:$0xf0]  ;;  %v2165_v20 = vor.u32 %v2858_v10, %v2162_v11 }
  0x7e   :  { %1424 = vmatpush.bf16.msrb.mxu2 %v2045_v24  ;;  %v2397_v24 = vor.u32 %v2916_v13, %v2394_v14  ;;  %v2261_v36 = vor.u32 %v2882_v21, %v2258_v25  ;;  %v2226_v14 = vld [vmem:[#allocation2 + $0x298] sm:$0xf0]  ;;  %v2856_v21 = vld [vmem:[#allocation2 + $0x204] sm:$0xf] }
  0x7f   :  { %1437 = vmatpush.bf16.msrb.mxu3 %v2109_v31  ;;  %v2914_v31 = vld [vmem:[#allocation2 + $0x3d4] sm:$0xf]  ;;  %v2229_v25 = vor.u32 %v2874_v12, %v2226_v14  ;;  %v2642_v10 = vld [vmem:[#allocation2 + $0x5d8] sm:$0xf0]  ;;  %v2928_v14 = vld [vmem:[#allocation2 + $0x444] sm:$0xf] }
  0x80   :  { %1399 = vmatpush.bf16.msrb.mxu0 %v1909_v42  ;;  %v2186_v42 = vld [vmem:[#allocation2 + $0x248] sm:$0xf0]  ;;  %v2389_v45 = vor.u32 %v2914_v31, %v2386_v34  ;;  %v2888_v34 = vld [vmem:[#allocation2 + $0x304] sm:$0xf] }
  0x81   :  { %1412 = vmatpush.bf16.msrb.mxu1 %v1973_v46  ;;  %v2896_v46 = vld [vmem:[#allocation2 + $0x344] sm:$0xf]  ;;  %v2218_v31 = vld [vmem:[#allocation2 + $0x288] sm:$0xf0] }
  0x82   :  { %1425 = vmatpush.bf16.msrb.mxu2 %v2037_v47  ;;  %v2314_v47 = vld [vmem:[#allocation2 + $0x348] sm:$0xf0] }
  0x83   :  { %1438 = vmatpush.bf16.msrb.mxu3 %v2101_v51  ;;  %v2178_v51 = vld [vmem:[#allocation2 + $0x238] sm:$0xf0] }
  0x84   :  { %1400 = vmatpush.bf16.msrb.mxu0 %v1901_v58  ;;  %v2370_v58 = vld [vmem:[#allocation2 + $0x3b8] sm:$0xf0]  ;;  %v2181_v59 = vor.u32 %v2862_v50, %v2178_v51 }
  0x85   :  { %1413 = vmatpush.bf16.msrb.mxu1 %v1965_v62  ;;  %v2860_v62 = vld [vmem:[#allocation2 + $0x224] sm:$0xf]  ;;  %v2373_v1 = vor.u32 %v2910_v57, %v2370_v58  ;;  %v2522_v58 = vld [vmem:[#allocation2 + $0x4e8] sm:$0xf0] }
  0x86   :  { %1426 = vmatpush.bf16.msrb.mxu2 %v2029_v63  ;;  %v2170_v63 = vld [vmem:[#allocation2 + $0x228] sm:$0xf0] }
  0x87   :  { %1439 = vmatpush.bf16.msrb.mxu3 %v2093_v2  ;;  %1401 = vmatmul.bf16.vlgmr.msrb.gmra.mxu0 %v3098_v27  ;;  %v2378_v27 = vld [vmem:[#allocation2 + $0x3c8] sm:$0xf0]  ;;  %v2173_v7 = vor.u32 %v2860_v62, %v2170_v63  ;;  %v2461_v63 = vor.u32 %v2932_v54, %v2458_v55  ;;  %v2922_v54 = vld [vmem:[#allocation2 + $0x414] sm:$0xf]  ;;  %v2418_v55 = vld [vmem:[#allocation2 + $0x418] sm:$0xf0] }
  0x88   :  { %1445 = vmatpush.bf16.msra.mxu0 %v2213_v3  ;;  %1414 = vmatmul.bf16.vlgmr.msrb.gmra.mxu1 %v3102_v33  ;;  %v2317_v33 = vor.u32 %v2896_v46, %v2314_v47  ;;  %v2381_v53 = vor.u32 %v2912_v48, %v2378_v27  ;;  %v2234_v2 = vld [vmem:[#allocation2 + $0x2a8] sm:$0xf0]  ;;  %v2892_v3 = vld [vmem:[#allocation2 + $0x324] sm:$0xf]  ;;  %v2530_v46 = vld [vmem:[#allocation2 + $0x4f8] sm:$0xf0]  ;;  %v2221_v27 = vor.u32 %v2872_v30, %v2218_v31 }
  0x89   :  { %1458 = vmatpush.bf16.msra.mxu1 %v2277_v4  ;;  %1427 = vmatmul.bf16.vlgmr.msrb.gmra.mxu2 %v3096_v26  ;;  %v2250_v26 = vld [vmem:[#allocation2 + $0x2c8] sm:$0xf0]  ;;  %v2237_v8 = vor.u32 %v2876_v0, %v2234_v2  ;;  %v2966_v47 = vld [vmem:[#allocation2 + $0x574] sm:$0xf]  ;;  %v2594_v48 = vld [vmem:[#allocation2 + $0x578] sm:$0xf0]  ;;  %v2525_v0 = vor.u32 %v2948_v56, %v2522_v58 }
  0x8a   :  { %1471 = vmatpush.bf16.msra.mxu2 %v2341_v5  ;;  %1440 = vmatmul.bf16.vlgmr.msrb.gmra.mxu3 %v3100_v32  ;;  %v2189_v32 = vor.u32 %v2864_v39, %v2186_v42  ;;  %v2253_v49 = vor.u32 %v2880_v44, %v2250_v26  ;;  %v2298_v4 = vld [vmem:[#allocation2 + $0x328] sm:$0xf0]  ;;  %v2908_v5 = vld [vmem:[#allocation2 + $0x3a4] sm:$0xf]  ;;  %v2934_v42 = vld [vmem:[#allocation2 + $0x474] sm:$0xf] }
  0x8b   :  { %1484 = vmatpush.bf16.msra.mxu3 %v2405_v9  ;;  %v2301_v9 = vor.u32 %v2892_v3, %v2298_v4  ;;  %v2365_v13 = vor.u32 %v2908_v5, %v2362_v6  ;;  %v2346_v39 = vld [vmem:[#allocation2 + $0x388] sm:$0xf0]  ;;  %v2466_v44 = vld [vmem:[#allocation2 + $0x478] sm:$0xf0]  ;;  %v2930_v2 = vld [vmem:[#allocation2 + $0x454] sm:$0xf] }
  0x8c   :  { %1446 = vmatpush.bf16.msra.mxu0 %v2205_v15  ;;  %v2890_v15 = vld [vmem:[#allocation2 + $0x314] sm:$0xf]  ;;  %v2469_v51 = vor.u32 %v2934_v42, %v2466_v44  ;;  %v2650_v62 = vld [vmem:[#allocation2 + $0x5e8] sm:$0xf0]  ;;  %v2450_v3 = vld [vmem:[#allocation2 + $0x458] sm:$0xf0] }
  0x8d   :  { %1459 = vmatpush.bf16.msra.mxu1 %v2269_v16  ;;  %v2290_v16 = vld [vmem:[#allocation2 + $0x318] sm:$0xf0]  ;;  %v2946_v4 = vld [vmem:[#allocation2 + $0x4d4] sm:$0xf]  ;;  %v2453_v11 = vor.u32 %v2930_v2, %v2450_v3 }
  0x8e   :  { %1472 = vmatpush.bf16.msra.mxu2 %v2333_v17  ;;  %v2906_v17 = vld [vmem:[#allocation2 + $0x394] sm:$0xf]  ;;  %v2293_v29 = vor.u32 %v2890_v15, %v2290_v16  ;;  %v2514_v6 = vld [vmem:[#allocation2 + $0x4d8] sm:$0xf0]  ;;  %v2442_v15 = vld [vmem:[#allocation2 + $0x448] sm:$0xf0] }
  0x8f   :  { %1485 = vmatpush.bf16.msra.mxu3 %v2397_v24  ;;  %v2154_v24 = vld [vmem:[#allocation2 + $0x208] sm:$0xf0]  ;;  %v2517_v12 = vor.u32 %v2946_v4, %v2514_v6  ;;  %v2942_v30 = vld [vmem:[#allocation2 + $0x4b4] sm:$0xf]  ;;  %v2482_v58 = vld [vmem:[#allocation2 + $0x498] sm:$0xf0] }
  0x90   :  { %1447 = vmatpush.bf16.msra.mxu0 %v2197_v35  ;;  %v2357_v35 = vor.u32 %v2906_v17, %v2354_v19  ;;  %v2157_v26 = vor.u32 %v2856_v21, %v2154_v24  ;;  %v2506_v17 = vld [vmem:[#allocation2 + $0x4c8] sm:$0xf0]  ;;  %v2960_v19 = vld [vmem:[#allocation2 + $0x544] sm:$0xf]  ;;  %v2445_v21 = vor.u32 %v2928_v14, %v2442_v15  ;;  %v2938_v56 = vld [vmem:[#allocation2 + $0x494] sm:$0xf] }
  0x91   :  { %1460 = vmatpush.bf16.msra.mxu1 %v2261_v36  ;;  %v2282_v36 = vld [vmem:[#allocation2 + $0x308] sm:$0xf0]  ;;  %v2485_v2 = vor.u32 %v2938_v56, %v2482_v58  ;;  %v2920_v4 = vld [vmem:[#allocation2 + $0x404] sm:$0xf] }
  0x92   :  { %1473 = vmatpush.bf16.msra.mxu2 %v2325_v38  ;;  %v2904_v38 = vld [vmem:[#allocation2 + $0x384] sm:$0xf] }
  0x93   :  { %1486 = vmatpush.bf16.msra.mxu3 %v2389_v45  ;;  %v2950_v45 = vld [vmem:[#allocation2 + $0x4f4] sm:$0xf]  ;;  %v2349_v50 = vor.u32 %v2904_v38, %v2346_v39  ;;  %v2626_v39 = vld [vmem:[#allocation2 + $0x5b8] sm:$0xf0]  ;;  %v2936_v6 = vld [vmem:[#allocation2 + $0x484] sm:$0xf] }
  0x94   :  { %1448 = vmatpush.bf16.msra.mxu0 %v2189_v32  ;;  %v2285_v32 = vor.u32 %v2888_v34, %v2282_v36  ;;  %v2533_v52 = vor.u32 %v2950_v45, %v2530_v46  ;;  %v2498_v34 = vld [vmem:[#allocation2 + $0x4b8] sm:$0xf0]  ;;  %v2974_v38 = vld [vmem:[#allocation2 + $0x5b4] sm:$0xf]  ;;  %v2426_v46 = vld [vmem:[#allocation2 + $0x428] sm:$0xf0] }
  0x95   :  { %1461 = vmatpush.bf16.msra.mxu1 %v2253_v49  ;;  %v2982_v49 = vld [vmem:[#allocation2 + $0x5f4] sm:$0xf]  ;;  %v2562_v36 = vld [vmem:[#allocation2 + $0x538] sm:$0xf0]  ;;  %v2501_v44 = vor.u32 %v2942_v30, %v2498_v34 }
  0x96   :  { %1474 = vmatpush.bf16.msra.mxu2 %v2317_v33  ;;  %v2658_v33 = vld [vmem:[#allocation2 + $0x5f8] sm:$0xf0] }
  0x97   :  { %1487 = vmatpush.bf16.msra.mxu3 %v2381_v53  ;;  %v2597_v53 = vor.u32 %v2966_v47, %v2594_v48  ;;  %v2661_v57 = vor.u32 %v2982_v49, %v2658_v33  ;;  %v2940_v47 = vld [vmem:[#allocation2 + $0x4a4] sm:$0xf]  ;;  %v2629_v48 = vor.u32 %v2974_v38, %v2626_v39  ;;  %v2554_v49 = vld [vmem:[#allocation2 + $0x528] sm:$0xf0] }
  0x98   :  { %1449 = vmatpush.bf16.msra.mxu0 %v2181_v59  ;;  %v2964_v59 = vld [vmem:[#allocation2 + $0x564] sm:$0xf] }
  0x99   :  { %1462 = vmatpush.bf16.msra.mxu1 %v2245_v60  ;;  %v2586_v60 = vld [vmem:[#allocation2 + $0x568] sm:$0xf0]  ;;  %v2972_v33 = vld [vmem:[#allocation2 + $0x5a4] sm:$0xf] }
  0x9a   :  { %1475 = vmatpush.bf16.msra.mxu2 %v2309_v61  ;;  %v2980_v61 = vld [vmem:[#allocation2 + $0x5e4] sm:$0xf] }
  0x9b   :  { %1488 = vmatpush.bf16.msra.mxu3 %v2373_v1  ;;  %v2589_v1 = vor.u32 %v2964_v59, %v2586_v60  ;;  %v2653_v5 = vor.u32 %v2980_v61, %v2650_v62  ;;  %v2954_v59 = vld [vmem:[#allocation2 + $0x514] sm:$0xf]  ;;  %v2546_v60 = vld [vmem:[#allocation2 + $0x518] sm:$0xf0] }
  0x9c   :  { %1450 = vmatpush.bf16.msra.mxu0 %v2173_v7  ;;  %v2962_v7 = vld [vmem:[#allocation2 + $0x554] sm:$0xf]  ;;  %v2610_v62 = vld [vmem:[#allocation2 + $0x598] sm:$0xf0]  ;;  %v2549_v3 = vor.u32 %v2954_v59, %v2546_v60 }
  0x9d   :  { %1463 = vmatpush.bf16.msra.mxu1 %v2237_v8  ;;  %v2578_v8 = vld [vmem:[#allocation2 + $0x558] sm:$0xf0]  ;;  %v2970_v61 = vld [vmem:[#allocation2 + $0x594] sm:$0xf] }
  0x9e   :  { %1476 = vmatpush.bf16.msra.mxu2 %v2301_v9  ;;  %v2978_v9 = vld [vmem:[#allocation2 + $0x5d4] sm:$0xf] }
  0x9f   :  { %1489 = vmatpush.bf16.msra.mxu3 %v2365_v13  ;;  %v2581_v13 = vor.u32 %v2962_v7, %v2578_v8  ;;  %v2645_v16 = vor.u32 %v2978_v9, %v2642_v10  ;;  %v2613_v7 = vor.u32 %v2970_v61, %v2610_v62  ;;  %v2474_v8 = vld [vmem:[#allocation2 + $0x488] sm:$0xf0]  ;;  %v2952_v9 = vld [vmem:[#allocation2 + $0x504] sm:$0xf] }
  0xa0   :  { %1451 = vmatpush.bf16.msra.mxu0 %v2165_v20  ;;  %v2976_v20 = vld [vmem:[#allocation2 + $0x5c4] sm:$0xf]  ;;  %v2538_v10 = vld [vmem:[#allocation2 + $0x508] sm:$0xf0]  ;;  %v2477_v15 = vor.u32 %v2936_v6, %v2474_v8 }
  0xa1   :  { %1464 = vmatpush.bf16.msra.mxu1 %v2229_v25  ;;  %v2926_v25 = vld [vmem:[#allocation2 + $0x434] sm:$0xf] }
  0xa2   :  { %1477 = vmatpush.bf16.msra.mxu2 %v2293_v29  ;;  %v2434_v29 = vld [vmem:[#allocation2 + $0x438] sm:$0xf0] }
  0xa3   :  { %1490 = vmatpush.bf16.msra.mxu3 %v2357_v35  ;;  %v2958_v35 = vld [vmem:[#allocation2 + $0x534] sm:$0xf]  ;;  %v2437_v42 = vor.u32 %v2926_v25, %v2434_v29 }
  0xa4   :  { %1452 = vmatpush.bf16.msra.mxu0 %v2157_v26  ;;  %v2565_v45 = vor.u32 %v2958_v35, %v2562_v36  ;;  %v2924_v26 = vld [vmem:[#allocation2 + $0x424] sm:$0xf] }
  0xa5   :  { %1465 = vmatpush.bf16.msra.mxu1 %v2221_v27  ;;  %v2490_v27 = vld [vmem:[#allocation2 + $0x4a8] sm:$0xf0] }
  0xa6   :  { %1478 = vmatpush.bf16.msra.mxu2 %v2285_v32  ;;  %v2956_v32 = vld [vmem:[#allocation2 + $0x524] sm:$0xf] }
  0xa7   :  { %1491 = vmatpush.bf16.msra.mxu3 %v2349_v50  ;;  %1453 = vmatmul.bf16.vlgmr.msra.gmra.mxu0 %v3113_v40  ;;  %v2570_v40 = vld [vmem:[#allocation2 + $0x548] sm:$0xf0] }
  0xa8   :  { %1497 = vmatpush.bf16.msrb.mxu0 %v2469_v51  ;;  %1466 = vmatmul.bf16.vlgmr.msra.gmra.mxu1 %v3117_v43  ;;  %v2573_v43 = vor.u32 %v2960_v19, %v2570_v40  ;;  %v2618_v50 = vld [vmem:[#allocation2 + $0x5a8] sm:$0xf0]  ;;  %v2429_v51 = vor.u32 %v2924_v26, %v2426_v46 }
  0xa9   :  { %1510 = vmatpush.bf16.msrb.mxu1 %v2533_v52  ;;  %1479 = vmatmul.bf16.vlgmr.msra.gmra.mxu2 %v3111_v37  ;;  %v2944_v37 = vld [vmem:[#allocation2 + $0x4c4] sm:$0xf]  ;;  %v2493_v52 = vor.u32 %v2940_v47, %v2490_v27 }
  0xaa   :  { %1523 = vmatpush.bf16.msrb.mxu2 %v2597_v53  ;;  %1492 = vmatmul.bf16.vlgmr.msra.gmra.mxu3 %v3115_v41  ;;  %v2634_v41 = vld [vmem:[#allocation2 + $0x5c8] sm:$0xf0]  ;;  %v2509_v24 = vor.u32 %v2944_v37, %v2506_v17  ;;  %v2557_v53 = vor.u32 %v2956_v32, %v2554_v49  ;;  %v2541_v37 = vor.u32 %v2952_v9, %v2538_v10 }
  0xab   :  { %1536 = vmatpush.bf16.msrb.mxu3 %v2661_v57  ;;  %v2637_v31 = vor.u32 %v2976_v20, %v2634_v41  ;;  %v2621_v57 = vor.u32 %v2972_v33, %v2618_v50 }
  0xac   :  { %1498 = vmatpush.bf16.msrb.mxu0 %v2461_v63  ;;  %v1246_v63 = vpop.f32.mrf.mxu0 }
  0xad   :  { %1511 = vmatpush.bf16.msrb.mxu1 %v2525_v0  ;;  %v2421_v0 = vor.u32 %v2922_v54, %v2418_v55 }
  0xae   :  { %1524 = vmatpush.bf16.msrb.mxu2 %v2589_v1  ;;  %v1259_v1 = vpop.f32.mrf.mxu1 }
  0xaf   :  { %1537 = vmatpush.bf16.msrb.mxu3 %v2653_v5  ;;  %v2410_v5 = vld [vmem:[#allocation2 + $0x408] sm:$0xf0] }
  0xb0   :  { %1499 = vmatpush.bf16.msrb.mxu0 %v2453_v11  ;;  %v2968_v11 = vld [vmem:[#allocation2 + $0x584] sm:$0xf]  ;;  %v2413_v14 = vor.u32 %v2920_v4, %v2410_v5 }
  0xb1   :  { %1512 = vmatpush.bf16.msrb.mxu1 %v2517_v12  ;;  %v2602_v12 = vld [vmem:[#allocation2 + $0x588] sm:$0xf0] }
  0xb2   :  { %1525 = vmatpush.bf16.msrb.mxu2 %v2581_v13  ;;  %v1272_v13 = vpop.f32.mrf.mxu2 }
  0xb3   :  { %1538 = vmatpush.bf16.msrb.mxu3 %v2645_v16  ;;  %v2605_v16 = vor.u32 %v2968_v11, %v2602_v12  ;;  %v1285_v17 = vpop.f32.mrf.mxu3 }
  0xb4   :  { %1500 = vmatpush.bf16.msrb.mxu0 %v2445_v21  ;;  %v1248_v19 = vpop.f32.mrf.mxu0 }
  0xb5   :  { %1513 = vmatpush.bf16.msrb.mxu1 %v2509_v24 }
  0xb6   :  { %1526 = vmatpush.bf16.msrb.mxu2 %v2573_v43  ;;  %v1261_v40 = vpop.f32.mrf.mxu1  ;;  %v1260_v43 = vadd.f32 %v1259_v1, %v1246_v63 }
  0xb7   :  { %1539 = vmatpush.bf16.msrb.mxu3 %v2637_v31 }
  0xb8   :  { %1501 = vmatpush.bf16.msrb.mxu0 %v2437_v42  ;;  %v1273_v31 = vadd.f32 %v1272_v13, %v1260_v43 }
  0xb9   :  { %1514 = vmatpush.bf16.msrb.mxu1 %v2501_v44 }
  0xba   :  { %1527 = vmatpush.bf16.msrb.mxu2 %v2565_v45  ;;  %v1274_v20 = vpop.f32.mrf.mxu2  ;;  %v1286_v35 = vadd.f32 %v1285_v17, %v1273_v31 }
  0xbb   :  { %1540 = vmatpush.bf16.msrb.mxu3 %v2629_v48  ;;  %v1287_v41 = vpop.f32.mrf.mxu3 }
  0xbc   :  { %1502 = vmatpush.bf16.msrb.mxu0 %v2429_v51 }
  0xbd   :  { %1515 = vmatpush.bf16.msrb.mxu1 %v2493_v52 }
  0xbe   :  { %1528 = vmatpush.bf16.msrb.mxu2 %v2557_v53 }
  0xbf   :  { %1541 = vmatpush.bf16.msrb.mxu3 %v2621_v57 }
  0xc0   :  { %1503 = vmatpush.bf16.msrb.mxu0 %v2421_v0 }
  0xc1   :  { %1516 = vmatpush.bf16.msrb.mxu1 %v2485_v2 }
  0xc2   :  { %1529 = vmatpush.bf16.msrb.mxu2 %v2549_v3 }
  0xc3   :  { %1542 = vmatpush.bf16.msrb.mxu3 %v2613_v7 }
  0xc4   :  { %1504 = vmatpush.bf16.msrb.mxu0 %v2413_v14  ;;  %v1298_v21 = vpop.f32.mrf.mxu0 }
  0xc5   :  { %1517 = vmatpush.bf16.msrb.mxu1 %v2477_v15  ;;  %v1311_v24 = vpop.f32.mrf.mxu1 }
  0xc6   :  { %1530 = vmatpush.bf16.msrb.mxu2 %v2541_v37 }
  0xc7   :  { %1543 = vmatpush.bf16.msrb.mxu3 %v2605_v16  ;;  %1505 = vmatmul.bf16.vlgmr.msrb.gmra.mxu0 %v3123_v18  ;;  %v1299_v18 = vadd.f32 %v1298_v21, %v1286_v35 }
  0xc8   :  { %1518 = vmatmul.bf16.vlgmr.msrb.gmra.mxu1 %v3127_v23 }
  0xc9   :  { %1531 = vmatmul.bf16.vlgmr.msrb.gmra.mxu2 %v3125_v22  ;;  %v1312_v39 = vadd.f32 %v1311_v24, %v1299_v18  ;;  %v2999_v18 = vld [vmem:[%s3378_s3 + $0x74] sm:$0xf0] }
  0xca   :  { %1544 = vmatmul.bf16.vlgmr.msrb.gmra.mxu3 %v3129_v28 }
  0xcc   :  { %v1324_v25 = vpop.f32.mrf.mxu2  ;;  %v1300_v30 = vpop.f32.mrf.mxu0 }
  0xcd   :  { %v1337_v29 = vpop.f32.mrf.mxu3  ;;  %v1313_v34 = vpop.f32.mrf.mxu1  ;;  %v1325_v42 = vadd.f32 %v1324_v25, %v1312_v39  ;;  %v2786_v39 = vld [vmem:[%s3378_s3 + $0xf0] sm:$0xf] }
  0xcf   :  { %v1338_v23 = vadd.f32 %v1337_v29, %v1325_v42 }
  0xd4   :  { %v1326_v36 = vpop.f32.mrf.mxu2 }
  0xd5   :  { %v1339_v38 = vpop.f32.mrf.mxu3 }
  0xd6   :  { %v2722_v38 = vld [vmem:[%s3378_s3 + $0x70] sm:$0xf] }
  0xd7   :  { %v2723_v42 = vor.u32 %v2999_v18, %v2722_v38  ;;  %v2756_v38 = vld [vmem:[%s3378_s3 + $0xb8] sm:$0xf0] }
  0xd9   :  { %1833 = vmatpush.bf16.msra.mxu0 %v2723_v42 }
  0xe4   :  { %v1350_v44 = vpop.f32.mrf.mxu0 }
  0xe5   :  { %v1363_v22 = vpop.f32.mrf.mxu1  ;;  %v1351_v45 = vadd.f32 %v1350_v44, %v1338_v23  ;;  %v3015_v23 = vld [vmem:[%s3378_s3 + $0xf4] sm:$0xf0]  ;;  %v2998_v44 = vld [vmem:[%s3378_s3 + $0x74] sm:$0xf] }
  0xe7   :  { %v1364_v28 = vadd.f32 %v1363_v22, %v1351_v45  ;;  %v2724_v22 = vld [vmem:[%s3378_s3 + $0x78] sm:$0xf0]  ;;  %v2787_v45 = vor.u32 %v3015_v23, %v2786_v39 }
  0xe9   :  { %1846 = vmatpush.bf16.msra.mxu1 %v2787_v45 }
  0xec   :  { %v1376_v26 = vpop.f32.mrf.mxu2  ;;  %v1352_v48 = vpop.f32.mrf.mxu0 }
  0xed   :  { %v1377_v46 = vadd.f32 %v1376_v26, %v1364_v28  ;;  %v1389_v47 = vpop.f32.mrf.mxu3  ;;  %v1365_v27 = vpop.f32.mrf.mxu1  ;;  %v2727_v28 = vor.u32 %v2998_v44, %v2724_v22  ;;  %v3014_v26 = vld [vmem:[%s3378_s3 + $0xf4] sm:$0xf] }
  0xef   :  { %v1390_v32 = vadd.f32 %v1389_v47, %v1377_v46  ;;  %v2788_v46 = vld [vmem:[%s3378_s3 + $0xf8] sm:$0xf0]  ;;  %v2714_v47 = vld [vmem:[%s3378_s3 + $0x60] sm:$0xf]  ;;  %1859 = vmatpush.bf16.msra.mxu2 %v2727_v28 }
  0xf0   :  { %v2791_v27 = vor.u32 %v3014_v26, %v2788_v46 }
  0xf1   :  { %1551 = vrot.lane.b32.xlu0 %v1390_v32, %s3051_s0 }
  0xf2   :  { %1872 = vmatpush.bf16.msra.mxu3 %v2791_v27  ;;  %v2989_v27 = vld [vmem:[%s3378_s3 + $0x24] sm:$0xf0] }
  0xf4   :  { %v1378_v49 = vpop.f32.mrf.mxu2 }
  0xf5   :  { %v1391_v33 = vpop.f32.mrf.mxu3  ;;  %v2778_v49 = vld [vmem:[%s3378_s3 + $0xe0] sm:$0xf] }
  0xf6   :  { %v3013_v33 = vld [vmem:[%s3378_s3 + $0xe4] sm:$0xf0] }
 0x104   :  { %v1402_v50 = vpop.f32.mrf.mxu0 }
 0x105   :  { %v1415_v51 = vpop.f32.mrf.mxu1 }
 0x106   :  { %v1416_v60 = vadd.f32 %v1415_v51, %v1402_v50 }
 0x10c   :  { %v1428_v52 = vpop.f32.mrf.mxu2  ;;  %v1404_v54 = vpop.f32.mrf.mxu0 }
 0x10d   :  { %v1441_v53 = vpop.f32.mrf.mxu3  ;;  %v1417_v55 = vpop.f32.mrf.mxu1  ;;  %v1429_v63 = vadd.f32 %v1428_v52, %v1416_v60  ;;  %v2779_v52 = vor.u32 %v3013_v33, %v2778_v49  ;;  %v2716_v54 = vld [vmem:[%s3378_s3 + $0x68] sm:$0xf0]  ;;  %v3005_v33 = vld [vmem:[%s3378_s3 + $0xa4] sm:$0xf0] }
 0x10e   :  { %v3012_v55 = vld [vmem:[%s3378_s3 + $0xe4] sm:$0xf] }
 0x10f   :  { %v1442_v2 = vadd.f32 %v1441_v53, %v1429_v63  ;;  %v2996_v53 = vld [vmem:[%s3378_s3 + $0x64] sm:$0xf]  ;;  %v3011_v63 = vld [vmem:[%s3378_s3 + $0xd4] sm:$0xf0]  ;;  %1847 = vmatpush.bf16.msra.mxu1 %v2779_v52 }
 0x114   :  { %v1430_v56 = vpop.f32.mrf.mxu2 }
 0x115   :  { %v1443_v57 = vpop.f32.mrf.mxu3  ;;  %v2719_v56 = vor.u32 %v2996_v53, %v2716_v54  ;;  %v3004_v54 = vld [vmem:[%s3378_s3 + $0xa4] sm:$0xf] }
 0x116   :  { %v2780_v57 = vld [vmem:[%s3378_s3 + $0xe8] sm:$0xf0] }
 0x117   :  { %1860 = vmatpush.bf16.msra.mxu2 %v2719_v56 }
 0x124   :  { %v1454_v58 = vpop.f32.mrf.mxu0 }
 0x125   :  { %v1467_v59 = vpop.f32.mrf.mxu1  ;;  %v1455_v5 = vadd.f32 %v1454_v58, %v1442_v2  ;;  %v2706_v58 = vld [vmem:[%s3378_s3 + $0x50] sm:$0xf] }
 0x127   :  { %v1468_v6 = vadd.f32 %v1467_v59, %v1455_v5  ;;  %v2995_v59 = vld [vmem:[%s3378_s3 + $0x54] sm:$0xf0]  ;;  %v2772_v5 = vld [vmem:[%s3378_s3 + $0xd8] sm:$0xf0] }
 0x128   :  { %v2707_v2 = vor.u32 %v2995_v59, %v2706_v58  ;;  %v2987_v58 = vld [vmem:[%s3378_s3 + $0x14] sm:$0xf0]  ;;  %v2738_v59 = vld [vmem:[%s3378_s3 + $0x90] sm:$0xf] }
 0x12c   :  { %v1480_v61 = vpop.f32.mrf.mxu2  ;;  %v1456_v0 = vpop.f32.mrf.mxu0 }
 0x12d   :  { %v1493_v62 = vpop.f32.mrf.mxu3  ;;  %v1469_v1 = vpop.f32.mrf.mxu1  ;;  %v1481_v7 = vadd.f32 %v1480_v61, %v1468_v6  ;;  %v2783_v61 = vor.u32 %v3012_v55, %v2780_v57  ;;  %v2994_v0 = vld [vmem:[%s3378_s3 + $0x54] sm:$0xf]  ;;  %v2748_v55 = vld [vmem:[%s3378_s3 + $0xa8] sm:$0xf0]  ;;  %v2674_v57 = vld [vmem:[%s3378_s3 + $0x10] sm:$0xf] }
 0x12e   :  { %v2751_v56 = vor.u32 %v3004_v54, %v2748_v55 }
 0x12f   :  { %v1494_v8 = vadd.f32 %v1493_v62, %v1481_v7  ;;  %v2770_v62 = vld [vmem:[%s3378_s3 + $0xd0] sm:$0xf]  ;;  %1873 = vmatpush.bf16.msra.mxu3 %v2783_v61  ;;  %v3003_v61 = vld [vmem:[%s3378_s3 + $0x94] sm:$0xf0] }
 0x130   :  { %v2771_v7 = vor.u32 %v3011_v63, %v2770_v62  ;;  %v2986_v62 = vld [vmem:[%s3378_s3 + $0x14] sm:$0xf]  ;;  %v2676_v63 = vld [vmem:[%s3378_s3 + $0x18] sm:$0xf0] }
 0x132   :  { %1848 = vmatpush.bf16.msra.mxu1 %v2771_v7  ;;  %v2730_v7 = vld [vmem:[%s3378_s3 + $0x80] sm:$0xf] }
 0x134   :  { %v1482_v3 = vpop.f32.mrf.mxu2 }
 0x135   :  { %v1495_v4 = vpop.f32.mrf.mxu3  ;;  %v2708_v3 = vld [vmem:[%s3378_s3 + $0x58] sm:$0xf0] }
 0x136   :  { %v3010_v4 = vld [vmem:[%s3378_s3 + $0xd4] sm:$0xf] }
 0x144   :  { %v1506_v9 = vpop.f32.mrf.mxu0 }
 0x145   :  { %v1519_v10 = vpop.f32.mrf.mxu1  ;;  %v1507_v11 = vadd.f32 %v1506_v9, %v1494_v8  ;;  %v2711_v8 = vor.u32 %v2994_v0, %v2708_v3  ;;  %v2698_v9 = vld [vmem:[%s3378_s3 + $0x40] sm:$0xf]  ;;  %v2739_v0 = vor.u32 %v3003_v61, %v2738_v59  ;;  %v2740_v3 = vld [vmem:[%s3378_s3 + $0x98] sm:$0xf0] }
 0x147   :  { %v1520_v12 = vadd.f32 %v1519_v10, %v1507_v11  ;;  %v2993_v10 = vld [vmem:[%s3378_s3 + $0x44] sm:$0xf0]  ;;  %v2762_v11 = vld [vmem:[%s3378_s3 + $0xc0] sm:$0xf]  ;;  %1861 = vmatpush.bf16.msra.mxu2 %v2711_v8 }
 0x14c   :  { %v1532_v13 = vpop.f32.mrf.mxu2  ;;  %v1508_v37 = vpop.f32.mrf.mxu0 }
 0x14d   :  { %v1533_v14 = vadd.f32 %v1532_v13, %v1520_v12  ;;  %v1545_v15 = vpop.f32.mrf.mxu3  ;;  %v1521_v16 = vpop.f32.mrf.mxu1  ;;  %v2775_v12 = vor.u32 %v3010_v4, %v2772_v5  ;;  %v3009_v13 = vld [vmem:[%s3378_s3 + $0xc4] sm:$0xf0]  ;;  %v2666_v5 = vld [vmem:[%s3378_s3] sm:$0xf] }
 0x14e   :  { %v3008_v16 = vld [vmem:[%s3378_s3 + $0xc4] sm:$0xf] }
 0x14f   :  { %v1546_v17 = vadd.f32 %v1545_v15, %v1533_v14  ;;  %v2992_v14 = vld [vmem:[%s3378_s3 + $0x44] sm:$0xf]  ;;  %v2700_v15 = vld [vmem:[%s3378_s3 + $0x48] sm:$0xf0]  ;;  %1874 = vmatpush.bf16.msra.mxu3 %v2775_v12 }
 0x151   :  { %1557 = vrot.lane.b32.xlu0 %v1546_v17, %s3051_s0 }
 0x154   :  { %v1534_v19 = vpop.f32.mrf.mxu2 }
 0x155   :  { %v1547_v40 = vpop.f32.mrf.mxu3  ;;  %v2699_v19 = vor.u32 %v2993_v10, %v2698_v9  ;;  %v3001_v9 = vld [vmem:[%s3378_s3 + $0x84] sm:$0xf0]  ;;  %v2984_v10 = vld [vmem:[%s3378_s3 + $0x4] sm:$0xf] }
 0x156   :  { %v2690_v40 = vld [vmem:[%s3378_s3 + $0x30] sm:$0xf]  ;;  %v2731_v12 = vor.u32 %v3001_v9, %v2730_v7 }
 0x163   :  { %v1552_v20 = vpop.permute.xlu0 %1551 }
 0x164   :  { %v1554_v41 = vadd.f32 %v1552_v20, %v1390_v32 }
 0x166   :  { %v1555_v21 = vadd.f32 %v1554_v41, %v1546_v17  ;;  %v2763_v41 = vor.u32 %v3009_v13, %v2762_v11  ;;  %v2668_v11 = vld [vmem:[%s3378_s3 + $0x8] sm:$0xf0] }
 0x167   :  { %v2671_v13 = vor.u32 %v2984_v10, %v2668_v11 }
 0x168   :  { %1849 = vmatpush.bf16.msra.mxu1 %v2763_v41  ;;  %v2663_v41 = vld [vmem:[%s3377_s2 + $0x2] ss:$4 sm:$0x3] }
 0x1c3   :  { %v1558_v24 = vpop.permute.xlu0 %1557 }
 0x1c4   :  { %v1560_v43 = vadd.f32 %v1558_v24, %v1555_v21  ;;  %v2703_v21 = vor.u32 %v2992_v14, %v2700_v15  ;;  %v2991_v24 = vld [vmem:[%s3378_s3 + $0x34] sm:$0xf0]  ;;  %v3000_v14 = vld [vmem:[%s3378_s3 + $0x84] sm:$0xf]  ;;  %v2732_v15 = vld [vmem:[%s3378_s3 + $0x88] sm:$0xf0] }
 0x1c5   :  { %v2691_v18 = vor.u32 %v2991_v24, %v2690_v40 }
 0x1c6   :  { %v1561_v25 = vmul.f32 0.25, %v1560_v43  ;;  %v2754_v43 = vld [vmem:[%s3378_s3 + $0xb0] sm:$0xf]  ;;  %1862 = vmatpush.bf16.msra.mxu2 %v2703_v21 }
 0x1c8   :  { %1563 = vrot.lane.b32.xlu1 %v1561_v25, %s3051_s0 }
 0x23a   :  { %v1564_v29 = vpop.permute.xlu1 %1563 }
 0x23b   :  { %v1567_v30 = vsel %vm1566_vm0, %v1561_v25, %v1564_v29  ;;  %v3007_v29 = vld [vmem:[%s3378_s3 + $0xb4] sm:$0xf0] }
 0x23c   :  { %v3151_v31 = vsub.f32 %v1390_v32, %v1567_v30  ;;  %v3153_v34 = vsub.f32 %v1546_v17, %v1567_v30  ;;  %v2997_v32 = vld [vmem:[%s3378_s3 + $0x64] sm:$0xf0]  ;;  %v2764_v17 = vld [vmem:[%s3378_s3 + $0xc8] sm:$0xf0]  ;;  %v2990_v30 = vld [vmem:[%s3378_s3 + $0x34] sm:$0xf]  ;;  %v2755_v39 = vor.u32 %v3007_v29, %v2754_v43 }
 0x23d   :  { %v2715_v51 = vor.u32 %v2997_v32, %v2714_v47  ;;  %v2767_v25 = vor.u32 %v3008_v16, %v2764_v17  ;;  %v2746_v32 = vld [vmem:[%s3378_s3 + $0xa0] sm:$0xf] }
 0x23e   :  { %v1571_v35 = vmul.f32 %v3153_v34, %v3153_v34  ;;  %v1570_v36 = vmul.f32 %v3151_v31, %v3151_v31  ;;  %1850 = vmatpush.bf16.msra.mxu1 %v2755_v39  ;;  %v2747_v52 = vor.u32 %v3005_v33, %v2746_v32  ;;  %v1603_v16 = vld [vmem:[%s3377_s2] ss:$4 sm:$0x3]  ;;  %v2662_v17 = vld [vmem:[%s3377_s2 + $0x1] ss:$4 sm:$0x3] }
 0x23f   :  { %1834 = vmatpush.bf16.msra.mxu0 %v2715_v51  ;;  %1875 = vmatpush.bf16.msra.mxu3 %v2767_v25  ;;  %v2684_v51 = vld [vmem:[%s3378_s3 + $0x28] sm:$0xf0]  ;;  %v1606_v40 = vperm.slane %v1603_v16, 1  ;;  %v1614_v24 = vperm.slane %v2662_v17, 0  ;;  %v1615_v43 = vperm.slane %v2662_v17, 1 }
 0x240   :  { %1580 = vrot.lane.b32.xlu2 %v1571_v35, %s3051_s0  ;;  %1574 = vrot.lane.b32.xlu1 %v1570_v36, %s3051_s0  ;;  %v1885_v32 = vld [vmem:[%s3380_s5] sm:$0x3] }
 0x242   :  { %1851 = vmatpush.bf16.msra.mxu1 %v2747_v52 }
 0x243   :  { %1835 = vmatpush.bf16.msra.mxu0 %v2707_v2  ;;  %v3002_v2 = vld [vmem:[%s3378_s3 + $0x94] sm:$0xf] }
 0x244   :  { %v2743_v4 = vor.u32 %v3002_v2, %v2740_v3 }
 0x246   :  { %1852 = vmatpush.bf16.msra.mxu1 %v2739_v0 }
 0x247   :  { %1836 = vmatpush.bf16.msra.mxu0 %v2699_v19  ;;  %v1605_v19 = vperm.slane %v1603_v16, 0 }
 0x24a   :  { %1853 = vmatpush.bf16.msra.mxu1 %v2731_v12 }
 0x24b   :  { %1837 = vmatpush.bf16.msra.mxu0 %v2691_v18 }
 0x29a   :  { %v1581_v1 = vpop.permute.xlu2 %1580 }
 0x2b2   :  { %v1575_v48 = vpop.permute.xlu1 %1574 }
 0x2b3   :  { %v1577_v50 = vadd.f32 %v1575_v48, %v1570_v36  ;;  %v3006_v36 = vld [vmem:[%s3378_s3 + $0xb4] sm:$0xf]  ;;  %v2682_v48 = vld [vmem:[%s3378_s3 + $0x20] sm:$0xf] }
 0x2b4   :  { %v2759_v23 = vor.u32 %v3006_v36, %v2756_v38  ;;  %v2683_v49 = vor.u32 %v2989_v27, %v2682_v48 }
 0x2b5   :  { %v1578_v60 = vadd.f32 %v1577_v50, %v1571_v35  ;;  %v2692_v35 = vld [vmem:[%s3378_s3 + $0x38] sm:$0xf0]  ;;  %v2988_v50 = vld [vmem:[%s3378_s3 + $0x24] sm:$0xf] }
 0x2b6   :  { %v2695_v42 = vor.u32 %v2990_v30, %v2692_v35  ;;  %1876 = vmatpush.bf16.msra.mxu3 %v2759_v23  ;;  %v2687_v53 = vor.u32 %v2988_v50, %v2684_v51  ;;  %1838 = vmatpush.bf16.msra.mxu0 %v2683_v49  ;;  %v1625_v30 = vperm.slane %v2663_v41, 0  ;;  %v1626_v35 = vperm.slane %v2663_v41, 1 }
 0x2b7   :  { %v1583_v6 = vadd.f32 %v1581_v1, %v1578_v60  ;;  %v2675_v60 = vor.u32 %v2987_v58, %v2674_v57  ;;  %v2679_v1 = vor.u32 %v2986_v62, %v2676_v63 }
 0x2b8   :  { %1863 = vmatpush.bf16.msra.mxu2 %v2695_v42 }
 0x2b9   :  { %v1584_v37 = vmul.f32 0.25, %v1583_v6  ;;  %v2985_v6 = vld [vmem:[%s3378_s3 + $0x4] sm:$0xf0] }
 0x2ba   :  { %1877 = vmatpush.bf16.msra.mxu3 %v2751_v56  ;;  %1839 = vmatpush.bf16.msra.mxu0 %v2675_v60  ;;  %v2667_v8 = vor.u32 %v2985_v6, %v2666_v5 }
 0x2bb   :  { %v1585_v20 = vadd.f32 1e-05, %v1584_v37  ;;  %v2735_v37 = vor.u32 %v3000_v14, %v2732_v15 }
 0x2bc   :  { %1864 = vmatpush.bf16.msra.mxu2 %v2687_v53 }
 0x2bd   :  { %3020 = vrsqrt.f32 %v1585_v20  ;;  %vm1592_vm2 = vweird.f32 %v1585_v20 }
 0x2be   :  { %1878 = vmatpush.bf16.msra.mxu3 %v2743_v4  ;;  %1840 = vmatpush.bf16.msra.mxu0 %v2667_v8 }
 0x2c0   :  { %1865 = vmatpush.bf16.msra.mxu2 %v2679_v1 }
 0x2c2   :  { %1879 = vmatpush.bf16.msra.mxu3 %v2735_v37 }
 0x2c3   :  { %v3021_v44 = vpop.eup %3020 }
 0x2c4   :  { %v1587_v22 = vmul.f32 %v3021_v44, %v1585_v20  ;;  %vm1593_vm1 = vweird.f32 %v3021_v44  ;;  %1866 = vmatpush.bf16.msra.mxu2 %v2671_v13 }
 0x2c5   :  { %vm1594_vm3 = vmor %vm1592_vm2, %vm1593_vm1 }
 0x2c6   :  { %v1588_v45 = vmul.f32 %v3021_v44, %v1587_v22 }
 0x2c8   :  { %v1589_v28 = vmul.f32 0.5, %v1588_v45 }
 0x2ca   :  { %v1590_v26 = vsub.f32 1.5, %v1589_v28 }
 0x2cc   :  { %v1591_v46 = vmul.f32 %v3021_v44, %v1590_v26 }
 0x2ce   :  { %v1595_v47 = vsel %vm1594_vm3, %v3021_v44, %v1591_v46 }
 0x2cf   :  { %1597 = vrot.lane.b32.xlu2 %v1595_v47, %s3051_s0 }
 0x329   :  { %v1598_v20 = vpop.permute.xlu2 %1597 }
 0x32a   :  { %v1600_v21 = vsel %vm1566_vm0, %v1595_v47, %v1598_v20 }
 0x32b   :  { %v1601_v25 = vmul.f32 %v1600_v21, %v3151_v31  ;;  %v1602_v29 = vmul.f32 %v1600_v21, %v3153_v34  ;;  %v1667_v31 = vld [vmem:[%s3379_s4] sm:$0x3] }
 0x32c   :  { %v1669_v34 = vperm.slane %v1667_v31, 0  ;;  %v1670_v48 = vperm.slane %v1667_v31, 1 }
 0x32d   :  { %v1609_v36 = vmul.f32 %v1605_v19, %v1601_v25  ;;  %v1610_v38 = vmul.f32 %v1606_v40, %v1602_v29 }
 0x32f   :  { %v1618_v18 = vadd.f32 %v1614_v24, %v1609_v36  ;;  %v1619_v39 = vadd.f32 %v1615_v43, %v1610_v38 }
 0x331   :  { %v1629_v42 = vmul.f32 %v1625_v30, %v1618_v18  ;;  %v1630_v23 = vmul.f32 %v1626_v35, %v1619_v39  ;;  %vm1620_vm4 = vcmp.ge.f32.partialorder %v1618_v18, 0.0  ;;  %vm1621_vm5 = vcmp.ge.f32.partialorder %v1619_v39, 0.0 }
 0x333   :  { %v1631_v44 = vsel %vm1620_vm4, %v1618_v18, %v1629_v42  ;;  %v1632_v22 = vsel %vm1621_vm5, %v1619_v39, %v1630_v23 }
 0x334   :  { %v1633_v45 = vpack.c.bf16 %v1631_v44, %v1631_v44  ;;  %v1634_v28 = vpack.c.bf16 %v1632_v22, %v1632_v22 }
 0x336   :  { %1841 = vmatmul.bf16.vlgmr.msra.gmra.mxu0 %v1633_v45  ;;  %1854 = vmatmul.bf16.vlgmr.msra.gmra.mxu1 %v1634_v28 }
 0x337   :  { %1867 = vmatmul.bf16.vlgmr.msra.gmra.mxu2 %v1633_v45  ;;  %1880 = vmatmul.bf16.vlgmr.msra.gmra.mxu3 %v1634_v28 }
 0x3b3   :  { %v1842_v26 = vpop.f32.mrf.mxu0  ;;  %v1855_v46 = vpop.f32.mrf.mxu1 }
 0x3b4   :  { %v1843_v47 = vadd.f32 %v1842_v26, %v1669_v34 }
 0x3b6   :  { %v1856_v27 = vadd.f32 %v1855_v46, %v1843_v47 }
 0x3b8   :  { %v1886_v53 = vmul.f32 %v1885_v32, %v1856_v27 }
 0x3ba   :  { %v1868_v49 = vpop.f32.mrf.mxu2  ;;  %v1881_v33 = vpop.f32.mrf.mxu3 }
 0x3bb   :  { %v1869_v50 = vadd.f32 %v1868_v49, %v1670_v48  ;;  %v1844_v51 = vpop.f32.mrf.mxu0  ;;  %v1857_v52 = vpop.f32.mrf.mxu1 }
 0x3bd   :  { %v1882_v54 = vadd.f32 %v1881_v33, %v1869_v50 }
 0x3bf   :  { %v1887_v55 = vadd.f32 %v1886_v53, %v1882_v54 }
 0x3c1   :  { %1888 = vst [vmem:[%s3381_s6] sm:$0x3] %v1887_v55 }
 0x3c2   :  { %v1870_v56 = vpop.f32.mrf.mxu2  ;;  %v1883_v57 = vpop.f32.mrf.mxu3 }
 0x3c3   :  { %1893 = vsyncpa [#allocation3], 1 }

</bundles_post_ra>
